<compile_context>
chip_gen: v6e
topology: v6e:2x2x1
jax: 0.10.0
libtpu: 0.0.40
codegen_flags: <defaults>
</compile_context>

<pallas_src>
import math
import functools

import jax
import jax.numpy as jnp
from jax.experimental import pallas as pl
from jax.experimental.pallas import tpu as pltpu

HIDDEN = 384          # config['hidden_size'] = 768 // 2
INTERMEDIATE = 1536   # config['intermediate_size'] = 4 * 384
_C1 = math.sqrt(2.0 / math.pi)
_C2 = _C1 * 0.044715


def _round_up(n, m):
    return ((n + m - 1) // m) * m


_TILE_CANDIDATES = (1024, 512, 384, 256, 128, 64, 32, 16)


def _choose_tile(M, tm_max):
    """Row-tile chooser.

    Goals (per perf review):
      * grid >= 2 whenever M allows it, so v7x's second TensorCore gets work
        (dimension_semantics=('parallel',) shards the row axis across TCs);
      * padding waste <= 25% on awkward M (e.g. M=260 no longer pads to 512);
      * rows a multiple of 16 (bf16 sublane packing after the in-kernel cast),
        preferring multiples of 128 for MXU-friendly tiles.
    """
    cap = min(tm_max, max(16, _round_up((M + 1) // 2, 16)))
    cands = [t for t in _TILE_CANDIDATES if t <= cap] or [16]
    for t in cands:
        m_pad = _round_up(M, t)
        if (m_pad - M) * 4 <= M:          # <= 25% padded rows
            return t, m_pad
    t = cands[-1]
    return t, _round_up(M, t)


def _mlp_kernel(x_ref, w1_ref, b1_ref, w2_ref, b2_ref, o_ref):
    # Cast the f32 activation tile to bf16 in-kernel (hidden under the MXU)
    # instead of a separate wrapper-side XLA cast+pad pass over x.
    x = x_ref[...].astype(jnp.bfloat16)
    # dense_1: (tm, H)bf16 @ (H, I)bf16 -> f32 accumulation on the MXU.
    h = jnp.dot(x, w1_ref[...], preferred_element_type=jnp.float32) + b1_ref[...]
    # NewGELUActivation (tanh approximation, same formula as the PyTorch
    # module), computed in f32:  0.5*h*(1 + tanh(C1*h + C2*h^3)), C2 = C1*0.044715.
    u = h * h
    t = jnp.tanh(h * (_C1 + _C2 * u))
    g = (0.5 * h) * (1.0 + t)
    # dense_2: bf16 operands for the MXU, f32 accumulation.
    out = jnp.dot(g.astype(jnp.bfloat16), w2_ref[...],
                  preferred_element_type=jnp.float32) + b2_ref[...]
    # dropout with p = config['hidden_dropout_prob'] = 0.0 -> identity.
    # TODO(synk): emit bf16 here if the downstream consumer accepts bf16
    # (halves the writeback bytes; mainly helps v6e's HBM margin).
    o_ref[...] = out.astype(o_ref.dtype)


@functools.partial(jax.jit, static_argnames=("tm_max",))
def mlp_forward(x, w1, b1, w2, b2, *, tm_max=512):
    """Fused MLP forward.

    x: (B, S, H) float32.
    w1: (H, I), w2: (I, H) -- ideally pre-cast to bf16 once at load time
    (then the astype below is a no-op).  b1: (1, I) f32, b2: (1, H) f32.
    Returns (B, S, H) float32.
    """
    B, S, H = x.shape
    assert H == HIDDEN
    M = B * S

    tm, M_pad = _choose_tile(M, tm_max)

    x2 = x.reshape(M, H)
    if M_pad != M:
        # Only a ragged tail is padded (stays f32 -- no dtype pass over x).
        # Padded rows compute GELU(b1)@W2+b2 garbage; sliced off below.
        x2 = jnp.pad(x2, ((0, M_pad - M), (0, 0)))

    # No-op when the weights are already bf16 (pre-cast at parameter load).
    w1b = w1.astype(jnp.bfloat16)
    w2b = w2.astype(jnp.bfloat16)

    grid = (M_pad // tm,)

    cost = pl.CostEstimate(
        flops=4 * M_pad * HIDDEN * INTERMEDIATE,        # two matmuls
        transcendentals=M_pad * INTERMEDIATE,           # tanh per element
        bytes_accessed=(2 * M_pad * HIDDEN * 4          # x in (f32) + out (f32)
                        + w1b.size * 2 + w2b.size * 2   # bf16 weights
                        + b1.size * 4 + b2.size * 4),
    )

    out2 = pl.pallas_call(
        _mlp_kernel,
        out_shape=jax.ShapeDtypeStruct((M_pad, H), x.dtype),
        grid_spec=pltpu.PrefetchScalarGridSpec(
            num_scalar_prefetch=0,
            grid=grid,
            in_specs=[
                pl.BlockSpec((tm, H), lambda i: (i, 0)),              # x rows (f32)
                # Constant index_maps: weights/biases stay VMEM-resident across
                # grid steps (no per-step re-DMA). bf16 weights total ~2.3 MiB.
                # (If VMEM ever gets tight, pipeline_mode=pl.Buffered(1) on
                # these specs would drop the redundant second buffer.)
                pl.BlockSpec((H, INTERMEDIATE), lambda i: (0, 0)),    # W1 (bf16)
                pl.BlockSpec((1, INTERMEDIATE), lambda i: (0, 0)),    # b1 (f32)
                pl.BlockSpec((INTERMEDIATE, H), lambda i: (0, 0)),    # W2 (bf16)
                pl.BlockSpec((1, H), lambda i: (0, 0)),               # b2 (f32)
            ],
            out_specs=pl.BlockSpec((tm, H), lambda i: (i, 0)),
        ),
        compiler_params=pltpu.CompilerParams(
            # Row tiles are independent -> shard the axis across TensorCores.
            dimension_semantics=("parallel",),
            # tm=512 per-step footprint (~10-13 MiB incl. f32 GELU temps) can
            # brush the 16/32 MiB scoped defaults; 48 MiB fits every
            # generation's physical VMEM with headroom.
            vmem_limit_bytes=48 * 1024 * 1024,
        ),
        cost_estimate=cost,
    )(x2, w1b, b1, w2b, b2)

    return out2[:M].reshape(B, S, H)


def _init_params(key):
    """Deterministic init mimicking nn.Linear's U(-1/sqrt(fan_in), 1/sqrt(fan_in))."""
    k1, k2, k3, k4 = jax.random.split(key, 4)
    lim1 = 1.0 / math.sqrt(HIDDEN)
    lim2 = 1.0 / math.sqrt(INTERMEDIATE)
    # stored as (in, out), i.e. transposed relative to torch's (out, in) weight
    w1 = jax.random.uniform(k1, (HIDDEN, INTERMEDIATE), jnp.float32, -lim1, lim1)
    b1 = jax.random.uniform(k2, (1, INTERMEDIATE), jnp.float32, -lim1, lim1)
    w2 = jax.random.uniform(k3, (INTERMEDIATE, HIDDEN), jnp.float32, -lim2, lim2)
    b2 = jax.random.uniform(k4, (1, HIDDEN), jnp.float32, -lim2, lim2)
    return w1, b1, w2, b2


def _new_gelu(h):
    return 0.5 * h * (1.0 + jnp.tanh(_C1 * (h + 0.044715 * h ** 3)))


def _reference_bf16(x2d, w1, b1, w2, b2):
    """Same math as the kernel (bf16 operands, f32 accumulation)."""
    xb = x2d.astype(jnp.bfloat16).astype(jnp.float32)
    w1f = w1.astype(jnp.bfloat16).astype(jnp.float32)
    w2f = w2.astype(jnp.bfloat16).astype(jnp.float32)
    h = xb @ w1f + b1[0]
    g = _new_gelu(h)
    return g.astype(jnp.bfloat16).astype(jnp.float32) @ w2f + b2[0]


def _reference_f32(x2d, w1, b1, w2, b2):
    """Full-precision reference of the PyTorch module's forward."""
    h = x2d @ w1 + b1[0]
    return _new_gelu(h) @ w2 + b2[0]


if __name__ == "__main__":
    key = jax.random.PRNGKey(0)
    kx, kp, kx2, kx3 = jax.random.split(key, 4)

    w1, b1, w2, b2 = _init_params(kp)
    # Pre-cast weights to bf16 once at parameter-load time (not per call).
    w1b = w1.astype(jnp.bfloat16)
    w2b = w2.astype(jnp.bfloat16)

    # Small shape consistent with the module: (batch, seq, hidden).
    B, S = 2, 8
    x = jax.random.normal(kx, (B, S, HIDDEN), jnp.float32)
    out = jax.block_until_ready(mlp_forward(x, w1b, b1, w2b, b2))
    assert out.shape == (B, S, HIDDEN)

    ref = _reference_bf16(x.reshape(-1, HIDDEN), w1, b1, w2, b2).reshape(B, S, HIDDEN)
    assert jnp.allclose(out, ref, atol=5e-3, rtol=5e-3), \
        float(jnp.max(jnp.abs(out - ref)))
    ref32 = _reference_f32(x.reshape(-1, HIDDEN), w1, b1, w2, b2).reshape(B, S, HIDDEN)
    assert jnp.allclose(out, ref32, atol=5e-2, rtol=5e-2)

    # Ragged M (not a multiple of the tile / of 16): exercises the padding path.
    B2, S2 = 1, 13
    xr = jax.random.normal(kx2, (B2, S2, HIDDEN), jnp.float32)
    out_r = jax.block_until_ready(mlp_forward(xr, w1b, b1, w2b, b2))
    ref_r = _reference_bf16(xr.reshape(-1, HIDDEN), w1, b1, w2, b2).reshape(B2, S2, HIDDEN)
    assert out_r.shape == (B2, S2, HIDDEN)
    assert jnp.allclose(out_r, ref_r, atol=5e-3, rtol=5e-3)

    # Multi-tile grid (>= 2 steps, so the 'parallel' axis has work for both
    # v7x TensorCores) plus a ragged tail.
    B3, S3 = 2, 300
    xc = jax.random.normal(kx3, (B3, S3, HIDDEN), jnp.float32)
    out_c = jax.block_until_ready(mlp_forward(xc, w1b, b1, w2b, b2))
    ref_c = _reference_bf16(xc.reshape(-1, HIDDEN), w1, b1, w2, b2).reshape(B3, S3, HIDDEN)
    assert jnp.allclose(out_c, ref_c, atol=5e-3, rtol=5e-3)

    print("KERNEL_OK")
</pallas_src>

<mosaic_0001>
module attributes {stable_mosaic.version = 11 : i64} {
  func.func @_mlp_kernel(%arg0: i32, %arg1: memref<16x384xf32, #tpu.memory_space<vmem>>, %arg2: memref<384x1536xbf16, #tpu.memory_space<vmem>>, %arg3: memref<1x1536xf32, #tpu.memory_space<vmem>>, %arg4: memref<1536x384xbf16, #tpu.memory_space<vmem>>, %arg5: memref<1x384xf32, #tpu.memory_space<vmem>>, %arg6: memref<16x384xf32, #tpu.memory_space<vmem>>) attributes {dimension_semantics = [#tpu.dimension_semantics<parallel>], iteration_bounds = array<i64: 1>, scalar_prefetch = 0 : i64, scratch_operands = 0 : i64, tpu.core_type = #tpu.core_type<tc>, window_params = [{transform_indices = @transform_0, window_bounds = array<i64: 16, 384>}, {pipeline_mode = #tpu.pipeline_mode<synchronous>, transform_indices = @transform_1, window_bounds = array<i64: 384, 1536>}, {pipeline_mode = #tpu.pipeline_mode<synchronous>, transform_indices = @transform_2, window_bounds = array<i64: 1, 1536>}, {pipeline_mode = #tpu.pipeline_mode<synchronous>, transform_indices = @transform_3, window_bounds = array<i64: 1536, 384>}, {pipeline_mode = #tpu.pipeline_mode<synchronous>, transform_indices = @transform_4, window_bounds = array<i64: 1, 384>}, {transform_indices = @transform_5, window_bounds = array<i64: 16, 384>}]} {
    %c0 = arith.constant 0 : index
    %c0_0 = arith.constant 0 : index
    %0 = vector.load %arg1[%c0, %c0_0] : memref<16x384xf32, #tpu.memory_space<vmem>>, vector<16x384xf32>
    %1 = arith.truncf %0 : vector<16x384xf32> to vector<16x384xbf16>
    %c0_1 = arith.constant 0 : index
    %c0_2 = arith.constant 0 : index
    %2 = vector.load %arg2[%c0_1, %c0_2] : memref<384x1536xbf16, #tpu.memory_space<vmem>>, vector<384x1536xbf16>
    %cst = arith.constant dense<0.000000e+00> : vector<16x1536xf32>
    %3 = tpu.matmul %1, %2, %cst {dimension_numbers = #tpu.dot_dimension_numbers<[1], [0], [0], [1], [0, 0, 1, 1], [], []>} : vector<16x384xbf16>, vector<384x1536xbf16>, vector<16x1536xf32> -> vector<16x1536xf32>
    %c0_3 = arith.constant 0 : index
    %c0_4 = arith.constant 0 : index
    %4 = vector.load %arg3[%c0_3, %c0_4] : memref<1x1536xf32, #tpu.memory_space<vmem>>, vector<1x1536xf32>
    %5 = vector.broadcast %4 : vector<1x1536xf32> to vector<16x1536xf32>
    %6 = arith.addf %3, %5 : vector<16x1536xf32>
    %7 = arith.mulf %6, %6 : vector<16x1536xf32>
    %cst_5 = arith.constant 0.0356774069 : f32
    %8 = vector.broadcast %cst_5 : f32 to vector<16x1536xf32>
    %9 = arith.mulf %8, %7 : vector<16x1536xf32>
    %cst_6 = arith.constant 0.797884583 : f32
    %10 = vector.broadcast %cst_6 : f32 to vector<16x1536xf32>
    %11 = arith.addf %10, %9 : vector<16x1536xf32>
    %12 = arith.mulf %6, %11 : vector<16x1536xf32>
    %13 = math.tanh %12 : vector<16x1536xf32>
    %cst_7 = arith.constant 5.000000e-01 : f32
    %14 = vector.broadcast %cst_7 : f32 to vector<16x1536xf32>
    %15 = arith.mulf %14, %6 : vector<16x1536xf32>
    %cst_8 = arith.constant 1.000000e+00 : f32
    %16 = vector.broadcast %cst_8 : f32 to vector<16x1536xf32>
    %17 = arith.addf %16, %13 : vector<16x1536xf32>
    %18 = arith.mulf %15, %17 : vector<16x1536xf32>
    %19 = arith.truncf %18 : vector<16x1536xf32> to vector<16x1536xbf16>
    %c0_9 = arith.constant 0 : index
    %c0_10 = arith.constant 0 : index
    %20 = vector.load %arg4[%c0_9, %c0_10] : memref<1536x384xbf16, #tpu.memory_space<vmem>>, vector<1536x384xbf16>
    %cst_11 = arith.constant dense<0.000000e+00> : vector<16x384xf32>
    %21 = tpu.matmul %19, %20, %cst_11 {dimension_numbers = #tpu.dot_dimension_numbers<[1], [0], [0], [1], [0, 0, 1, 1], [], []>} : vector<16x1536xbf16>, vector<1536x384xbf16>, vector<16x384xf32> -> vector<16x384xf32>
    %c0_12 = arith.constant 0 : index
    %c0_13 = arith.constant 0 : index
    %22 = vector.load %arg5[%c0_12, %c0_13] : memref<1x384xf32, #tpu.memory_space<vmem>>, vector<1x384xf32>
    %23 = vector.broadcast %22 : vector<1x384xf32> to vector<16x384xf32>
    %24 = arith.addf %21, %23 : vector<16x384xf32>
    %c0_14 = arith.constant 0 : index
    %c0_15 = arith.constant 0 : index
    %25 = vector.load %arg6[%c0_14, %c0_15] : memref<16x384xf32, #tpu.memory_space<vmem>>, vector<16x384xf32>
    tpu.vector_store %arg6[%c0_14, %c0_15], %24 {strides = array<i32>} : memref<16x384xf32, #tpu.memory_space<vmem>>, vector<16x384xf32>,
    return
  }
  func.func @transform_0(%arg0: i32) -> (i32, i32) {
    %c0_i32 = arith.constant 0 : i32
    %c0_i32_0 = arith.constant 0 : i32
    return %arg0, %c0_i32 : i32, i32
  }
  func.func @transform_1(%arg0: i32) -> (i32, i32) {
    %c0_i32 = arith.constant 0 : i32
    %c0_i32_0 = arith.constant 0 : i32
    %c0_i32_1 = arith.constant 0 : i32
    return %c0_i32, %c0_i32_0 : i32, i32
  }
  func.func @transform_2(%arg0: i32) -> (i32, i32) {
    %c0_i32 = arith.constant 0 : i32
    %c0_i32_0 = arith.constant 0 : i32
    %c0_i32_1 = arith.constant 0 : i32
    return %c0_i32, %c0_i32_0 : i32, i32
  }
  func.func @transform_3(%arg0: i32) -> (i32, i32) {
    %c0_i32 = arith.constant 0 : i32
    %c0_i32_0 = arith.constant 0 : i32
    %c0_i32_1 = arith.constant 0 : i32
    return %c0_i32, %c0_i32_0 : i32, i32
  }
  func.func @transform_4(%arg0: i32) -> (i32, i32) {
    %c0_i32 = arith.constant 0 : i32
    %c0_i32_0 = arith.constant 0 : i32
    %c0_i32_1 = arith.constant 0 : i32
    return %c0_i32, %c0_i32_0 : i32, i32
  }
  func.func @transform_5(%arg0: i32) -> (i32, i32) {
    %c0_i32 = arith.constant 0 : i32
    %c0_i32_0 = arith.constant 0 : i32
    return %arg0, %c0_i32 : i32, i32
  }
}

</mosaic_0001>

<bundles_post_ra>
// kernel: mlp_forward.1
= control target key start
LH: loop header
LB: loop body
LE: loop exit
PB: predicated region body
PF: predicated region fallthrough
CT: control target
= control target key end

     0   :  { %10 = vsyncpa [#allocation3], 0  ;;  %s7129_s0 = inlined_call_operand.hbm [shape: f32[16,384], index: 0, kind: input, shape index: {}]   ;;  %s7130_s1 = inlined_call_operand.hbm [shape: bf16[384,1536], index: 1, kind: input, shape index: {}]   ;;  %s7131_s2 = inlined_call_operand.hbm [shape: f32[1,1536], index: 2, kind: input, shape index: {}]   ;;  %s7132_s3 = inlined_call_operand.hbm [shape: bf16[1536,384], index: 3, kind: input, shape index: {}]   ;;  %s7133_s4 = inlined_call_operand.hbm [shape: f32[1,384], index: 4, kind: input, shape index: {}]   ;;  %s7134_s5 = inlined_call_operand.hbm [shape: f32[16,384], index: 5, kind: output, shape index: {}]  }
   0x1   :  { %11 = vsyncpa [#allocation6], 0 }
   0x2   :  { %12 = vsyncpa [#allocation9], 0 }
   0x3   :  { %13 = vsyncpa [#allocation4], 0  ;;  %s6787_s18 = smov [#allocation5]  }
   0x4   :  { %s31_s19 = sshll.u32 %s6787_s18, 4  ;;  %s32_s19 = int_to_ptr.vmem [resolvable:$true] %s31_s19 }
   0x5   :  { %s6667_s20 = scalar_lea.vmem %s32_s19, 36864  ;;  %p6672_p1 = scmp.lt.s32.totalorder %s32_s19, %s32_s19 }
   0x6   :  { %p6668_p0 = scmp.ne.s32.totalorder %s32_s19, %s6667_s20  ;;  %p6673_p2 = scmp.lt.s32.totalorder %s6667_s20, %s6667_s20 }
   0x8   :  { %p6674_p3 = por %p6673_p2, %p6672_p1 }
   0xa   :  { %p6675_p4 = pnand %p6674_p3, %p6668_p0 }
   0xc   :  { %6678 = shalt.err (!%p6675_p4)
}
   0xd   :  { %s6788_s21 = smov 768   ;;  %s6789_s22 = smov 48  }
   0xe   :  { %37 = dma.hbm_to_vmem [thread:$0]  %s7130_s1, 36864, %s32_s19, [#allocation6], %s6788_s21, %s6788_s21, %s6789_s22  }
   0xf   :  { %s6790_s25 = smov [#allocation8]  }
  0x10   :  { %s53_s26 = sshll.u32 %s6790_s25, 4  ;;  %s54_s26 = int_to_ptr.vmem [resolvable:$true] %s53_s26 }
  0x11   :  { %s6687_s27 = scalar_lea.vmem %s54_s26, 36864  ;;  %p6692_p6 = scmp.lt.s32.totalorder %s54_s26, %s54_s26 }
  0x12   :  { %p6688_p5 = scmp.ne.s32.totalorder %s54_s26, %s6687_s27  ;;  %p6693_p7 = scmp.lt.s32.totalorder %s6687_s27, %s6687_s27 }
  0x14   :  { %p6694_p8 = por %p6693_p7, %p6692_p6 }
  0x16   :  { %p6695_p9 = pnand %p6694_p8, %p6688_p5 }
  0x18   :  { %6698 = shalt.err (!%p6695_p9)
}
  0x19   :  { %s6791_s28 = smov 192   ;;  %s6792_s29 = smov 12  }
  0x1a   :  { %59 = dma.hbm_to_vmem [thread:$0]  %s7132_s3, 36864, %s54_s26, [#allocation9], %s6791_s28, %s6791_s28, %s6792_s29  }
  0x1b   :  { %s6793_s7 = smov [#allocation2]  }
  0x1c   :  { %s19_s8 = sshll.u32 %s6793_s7, 4  ;;  %s20_s8 = int_to_ptr.vmem [resolvable:$true] %s19_s8 }
  0x1d   :  { %s6707_s1 = scalar_lea.vmem %s20_s8, 768  ;;  %p6712_p11 = scmp.lt.s32.totalorder %s20_s8, %s20_s8 }
  0x1e   :  { %p6708_p10 = scmp.ne.s32.totalorder %s20_s8, %s6707_s1  ;;  %p6713_p12 = scmp.lt.s32.totalorder %s6707_s1, %s6707_s1 }
  0x20   :  { %p6714_p13 = por %p6713_p12, %p6712_p11 }
  0x22   :  { %p6715_p0 = pnand %p6714_p13, %p6708_p10 }
  0x24   :  { %6718 = shalt.err (!%p6715_p0)
}
  0x25   :  { %s6794_s9 = smov 384   ;;  %s6795_s10 = smov 24  }
  0x26   :  { %25 = dma.hbm_to_vmem [thread:$0]  %s7129_s0, 768, %s20_s8, [#allocation3], %s6794_s9, %s6794_s9, %s6795_s10  }
  0x27   :  { %s6796_s3 = smov [#allocation7]   ;;  %s6797_s14 = smov [#allocation10]  }
  0x28   :  { %s44_s13 = sshll.u32 %s6796_s3, 4  ;;  %s66_s15 = sshll.u32 %s6797_s14, 4  ;;  %s45_s13 = int_to_ptr.vmem [resolvable:$true] %s44_s13  ;;  %s67_s15 = int_to_ptr.vmem [resolvable:$true] %s66_s15 }
  0x29   :  { %s6727_s16 = scalar_lea.vmem %s45_s13, 192  ;;  %p6732_p2 = scmp.lt.s32.totalorder %s45_s13, %s45_s13 }
  0x2a   :  { %p6728_p1 = scmp.ne.s32.totalorder %s45_s13, %s6727_s16  ;;  %p6733_p3 = scmp.lt.s32.totalorder %s6727_s16, %s6727_s16 }
  0x2c   :  { %p6734_p4 = por %p6733_p3, %p6732_p2 }
  0x2e   :  { %p6735_p5 = pnand %p6734_p4, %p6728_p1 }
  0x30   :  { %6738 = shalt.err (!%p6735_p5)
}
  0x31   :  { %47 = dma.hbm_to_vmem [thread:$0]  %s7131_s2, 192, %s45_s13, [#allocation6]  }
  0x32   :  { %s6747_s19 = scalar_lea.vmem %s67_s15, 48  ;;  %s6751_s0 = scalar_lea.vmem %s67_s15, 64 }
  0x33   :  { %p6748_p6 = scmp.ne.s32.totalorder %s67_s15, %s6747_s19  ;;  %p6752_p7 = scmp.lt.s32.totalorder %s67_s15, %s67_s15 }
  0x34   :  { %p6753_p8 = scmp.lt.s32.totalorder %s6751_s0, %s6747_s19 }
  0x36   :  { %p6754_p9 = por %p6753_p8, %p6752_p7 }
  0x38   :  { %p6755_p10 = pnand %p6754_p9, %p6748_p6 }
  0x3a   :  { %6758 = shalt.err (!%p6755_p10)
}
  0x3b   :  { %69 = dma.hbm_to_vmem [thread:$0]  %s7133_s4, 48, %s67_s15, [#allocation9]  }
  0x3c   :  { %6779 = dma.done.wait [#allocation3], 768  }
  0x3d   :  { %6780 = vsyncadd [#allocation3], 4294966528 }
  0x3e   :  { %6781 = dma.done.wait [#allocation6], 37056  }
  0x3f   :  { %6782 = vsyncadd [#allocation6], 4294930240 }
  0x40   :  { %6783 = dma.done.wait [#allocation9], 36912  }
  0x41   :  { %6784 = vsyncadd [#allocation9], 4294930384  ;;  %v6798_v0 = vmov 0   ;;  %v5794_v1 = vld [vmem:[#allocation5 + $0x2a4] ss:$48 sps:$4 sm:$0xff]   ;;  %v91_v34 = vld [vmem:[#allocation2 + $0x28] sm:$0xff] }
  0x42   :  { %1962 = vmatprep.mubr.bf16.mxu1 %v6798_v0  ;;  %v5796_v2 = vld [vmem:[#allocation5 + $0x8a4] ss:$48 sps:$4 sm:$0xff]   ;;  %1887 = vmatprep.subr.bf16.mxu0 %v5794_v1  ;;  %v5798_v3 = vld [vmem:[#allocation5 + $0x2a0] ss:$48 sps:$4 sm:$0xff]   ;;  %v5846_v36 = vld [vmem:[#allocation5 + $0x2ac] ss:$48 sps:$4 sm:$0xff]  }
  0x43   :  { %v5799_v4 = vld [vmem:[#allocation5 + $0x8a0] ss:$48 sps:$4 sm:$0xff]   ;;  %1930 = vmatprep.subr.bf16.mxu1 %v5796_v2  ;;  %v5800_v5 = vld [vmem:[#allocation5 + $0x244] ss:$48 sps:$4 sm:$0xff]   ;;  %1888 = vmatpush1.bf16.msra.mxu0 %v5798_v3  ;;  %v5844_v38 = vld [vmem:[#allocation5 + $0x2a8] ss:$48 sps:$4 sm:$0xff]  }
  0x44   :  { %1931 = vmatpush1.bf16.msra.mxu1 %v5799_v4  ;;  %v5802_v6 = vld [vmem:[#allocation5 + $0x844] ss:$48 sps:$4 sm:$0xff]   ;;  %v5804_v7 = vld [vmem:[#allocation5 + $0x240] ss:$48 sps:$4 sm:$0xff]   ;;  %1889 = vmatprep.subr.bf16.mxu0 %v5800_v5  ;;  %v5852_v41 = vld [vmem:[#allocation5 + $0x24c] ss:$48 sps:$4 sm:$0xff]  }
  0x45   :  { %v5805_v8 = vld [vmem:[#allocation5 + $0x840] ss:$48 sps:$4 sm:$0xff]   ;;  %1932 = vmatprep.subr.bf16.mxu1 %v5802_v6  ;;  %v5806_v9 = vld [vmem:[#allocation5 + $0x1e4] ss:$48 sps:$4 sm:$0xff]   ;;  %v5850_v42 = vld [vmem:[#allocation5 + $0x248] ss:$48 sps:$4 sm:$0xff]  }
  0x46   :  { %v5808_v10 = vld [vmem:[#allocation5 + $0x7e4] ss:$48 sps:$4 sm:$0xff]   ;;  %v5810_v11 = vld [vmem:[#allocation5 + $0x1e0] ss:$48 sps:$4 sm:$0xff]   ;;  %v5858_v45 = vld [vmem:[#allocation5 + $0x1ec] ss:$48 sps:$4 sm:$0xff]  }
  0x47   :  { %v5811_v12 = vld [vmem:[#allocation5 + $0x7e0] ss:$48 sps:$4 sm:$0xff]   ;;  %1890 = vmatpush1.bf16.msra.mxu0 %v5804_v7  ;;  %v5812_v13 = vld [vmem:[#allocation5 + $0x184] ss:$48 sps:$4 sm:$0xff]   ;;  %v5856_v46 = vld [vmem:[#allocation5 + $0x1e8] ss:$48 sps:$4 sm:$0xff]  }
  0x48   :  { %1933 = vmatpush1.bf16.msra.mxu1 %v5805_v8  ;;  %1891 = vmatprep.subr.bf16.mxu0 %v5806_v9  ;;  %v5814_v14 = vld [vmem:[#allocation5 + $0x784] ss:$48 sps:$4 sm:$0xff]   ;;  %v5816_v15 = vld [vmem:[#allocation5 + $0x180] ss:$48 sps:$4 sm:$0xff]   ;;  %v5864_v49 = vld [vmem:[#allocation5 + $0x18c] ss:$48 sps:$4 sm:$0xff]  }
  0x49   :  { %1934 = vmatprep.subr.bf16.mxu1 %v5808_v10  ;;  %v5817_v16 = vld [vmem:[#allocation5 + $0x780] ss:$48 sps:$4 sm:$0xff]   ;;  %v5818_v17 = vld [vmem:[#allocation5 + $0x124] ss:$48 sps:$4 sm:$0xff]   ;;  %v87_v50 = vld [vmem:[#allocation2 + $0x8] sm:$0xff]  ;;  %s6799_s2 = smov [#allocation11]  }
  0x4a   :  { %v5820_v18 = vld [vmem:[#allocation5 + $0x724] ss:$48 sps:$4 sm:$0xff]   ;;  %v5822_v19 = vld [vmem:[#allocation5 + $0x120] ss:$48 sps:$4 sm:$0xff]   ;;  %v5862_v52 = vld [vmem:[#allocation5 + $0x188] ss:$48 sps:$4 sm:$0xff]  }
  0x4b   :  { %1892 = vmatpush1.bf16.msra.mxu0 %v5810_v11  ;;  %v5823_v20 = vld [vmem:[#allocation5 + $0x720] ss:$48 sps:$4 sm:$0xff]   ;;  %v5824_v21 = vld [vmem:[#allocation5 + $0xc4] ss:$48 sps:$4 sm:$0xff]   ;;  %v5870_v56 = vld [vmem:[#allocation5 + $0x12c] ss:$48 sps:$4 sm:$0xff]  }
  0x4c   :  { %1935 = vmatpush1.bf16.msra.mxu1 %v5811_v12  ;;  %1893 = vmatprep.subr.bf16.mxu0 %v5812_v13  ;;  %v5826_v22 = vld [vmem:[#allocation5 + $0x6c4] ss:$48 sps:$4 sm:$0xff]   ;;  %v5828_v23 = vld [vmem:[#allocation5 + $0xc0] ss:$48 sps:$4 sm:$0xff]   ;;  %v5868_v57 = vld [vmem:[#allocation5 + $0x128] ss:$48 sps:$4 sm:$0xff]  }
  0x4d   :  { %1936 = vmatprep.subr.bf16.mxu1 %v5814_v14  ;;  %v5829_v24 = vld [vmem:[#allocation5 + $0x6c0] ss:$48 sps:$4 sm:$0xff]   ;;  %v5830_v25 = vld [vmem:[#allocation5 + $0x64] ss:$48 sps:$4 sm:$0xff]   ;;  %v5876_v60 = vld [vmem:[#allocation5 + $0xcc] ss:$48 sps:$4 sm:$0xff]  }
  0x4e   :  { %v5832_v26 = vld [vmem:[#allocation5 + $0x664] ss:$48 sps:$4 sm:$0xff]   ;;  %v5834_v27 = vld [vmem:[#allocation5 + $0x60] ss:$48 sps:$4 sm:$0xff]   ;;  %v5874_v61 = vld [vmem:[#allocation5 + $0xc8] ss:$48 sps:$4 sm:$0xff]  }
  0x4f   :  { %1894 = vmatpush1.bf16.msra.mxu0 %v5816_v15  ;;  %v5835_v28 = vld [vmem:[#allocation5 + $0x660] ss:$48 sps:$4 sm:$0xff]   ;;  %v5836_v29 = vld [vmem:[#allocation5 + $0x4] ss:$48 sps:$4 sm:$0xff]   ;;  %v5882_v1 = vld [vmem:[#allocation5 + $0x6c] ss:$48 sps:$4 sm:$0xff]  }
  0x50   :  { %1937 = vmatpush1.bf16.msra.mxu1 %v5817_v16  ;;  %1895 = vmatprep.subr.bf16.mxu0 %v5818_v17  ;;  %v5838_v30 = vld [vmem:[#allocation5 + $0x604] ss:$48 sps:$4 sm:$0xff]   ;;  %v5840_v31 = vld [vmem:[#allocation5] ss:$48 sps:$4 sm:$0xff]   ;;  %v5880_v2 = vld [vmem:[#allocation5 + $0x68] ss:$48 sps:$4 sm:$0xff]  }
  0x51   :  { %1938 = vmatprep.subr.bf16.mxu1 %v5820_v18  ;;  %v5841_v32 = vld [vmem:[#allocation5 + $0x600] ss:$48 sps:$4 sm:$0xff]   ;;  %v5842_v35 = vld [vmem:[#allocation5 + $0x5a4] ss:$48 sps:$4 sm:$0xff]   ;;  %v5888_v5 = vld [vmem:[#allocation5 + $0xc] ss:$48 sps:$4 sm:$0xff]  }
  0x52   :  { %v88_v33 = vld [vmem:[#allocation2 + $0x10] sm:$0xff]  ;;  %v90_v51 = vld [vmem:[#allocation2 + $0x20] sm:$0xff]  ;;  %v5886_v6 = vld [vmem:[#allocation5 + $0x8] ss:$48 sps:$4 sm:$0xff]   ;;  %s5059_s4 = sshll.u32 %s6799_s2, 4  ;;  %s5060_s4 = int_to_ptr.vmem [resolvable:$true] %s5059_s4 }
  0x53   :  { %1896 = vmatpush1.bf16.msra.mxu0 %v5822_v19  ;;  %v6849_v37 = vpack.c.bf16 %v91_v34, %v88_v33  ;;  %v5847_v39 = vld [vmem:[#allocation5 + $0x5a0] ss:$48 sps:$4 sm:$0xff]   ;;  %v5848_v40 = vld [vmem:[#allocation5 + $0x544] ss:$48 sps:$4 sm:$0xff]   ;;  %v6852_v54 = vpack.c.bf16 %v90_v51, %v87_v50  ;;  %v89_v9 = vld [vmem:[#allocation2 + $0x18] sm:$0xff]  ;;  %s6759_s22 = scalar_lea.vmem %s5060_s4, 768  ;;  %p6764_p12 = scmp.lt.s32.totalorder %s5060_s4, %s5060_s4 }
  0x54   :  { %1939 = vmatpush1.bf16.msra.mxu1 %v5823_v20  ;;  %1897 = vmatprep.subr.bf16.mxu0 %v5824_v21  ;;  %v5853_v43 = vld [vmem:[#allocation5 + $0x540] ss:$48 sps:$4 sm:$0xff]   ;;  %v5854_v44 = vld [vmem:[#allocation5 + $0x4e4] ss:$48 sps:$4 sm:$0xff]   ;;  %v5892_v10 = vld [vmem:[#allocation5 + $0x5ac] ss:$48 sps:$4 sm:$0xff]   ;;  %p6760_p11 = scmp.ne.s32.totalorder %s5060_s4, %s6759_s22  ;;  %p6765_p13 = scmp.lt.s32.totalorder %s6759_s22, %s6759_s22 }
  0x55   :  { %1940 = vmatprep.subr.bf16.mxu1 %v5826_v22  ;;  %v5859_v47 = vld [vmem:[#allocation5 + $0x4e0] ss:$48 sps:$4 sm:$0xff]   ;;  %v5860_v48 = vld [vmem:[#allocation5 + $0x484] ss:$48 sps:$4 sm:$0xff]   ;;  %1919 = vmatprep.mubr.bf16.mxu0 %v6852_v54  ;;  %v5895_v11 = vld [vmem:[#allocation5 + $0x8ac] ss:$48 sps:$4 sm:$0xff]  }
  0x56   :  { %v5865_v53 = vld [vmem:[#allocation5 + $0x480] ss:$48 sps:$4 sm:$0xff]   ;;  %v5866_v55 = vld [vmem:[#allocation5 + $0x424] ss:$48 sps:$4 sm:$0xff]   ;;  %v5890_v13 = vld [vmem:[#allocation5 + $0x5a8] ss:$48 sps:$4 sm:$0xff]   ;;  %p6766_p0 = por %p6765_p13, %p6764_p12 }
  0x57   :  { %1898 = vmatpush1.bf16.msra.mxu0 %v5828_v23  ;;  %v5871_v58 = vld [vmem:[#allocation5 + $0x420] ss:$48 sps:$4 sm:$0xff]   ;;  %v5872_v59 = vld [vmem:[#allocation5 + $0x3c4] ss:$48 sps:$4 sm:$0xff]   ;;  %v5893_v14 = vld [vmem:[#allocation5 + $0x8a8] ss:$48 sps:$4 sm:$0xff]  }
  0x58   :  { %1941 = vmatpush1.bf16.msra.mxu1 %v5829_v24  ;;  %1899 = vmatprep.subr.bf16.mxu0 %v5830_v25  ;;  %v5877_v62 = vld [vmem:[#allocation5 + $0x3c0] ss:$48 sps:$4 sm:$0xff]   ;;  %v5878_v63 = vld [vmem:[#allocation5 + $0x364] ss:$48 sps:$4 sm:$0xff]   ;;  %v5898_v15 = vld [vmem:[#allocation5 + $0x54c] ss:$48 sps:$4 sm:$0xff]   ;;  %p6767_p1 = pnand %p6766_p0, %p6760_p11 }
  0x59   :  { %1942 = vmatprep.subr.bf16.mxu1 %v5832_v26  ;;  %v5883_v3 = vld [vmem:[#allocation5 + $0x360] ss:$48 sps:$4 sm:$0xff]   ;;  %v5884_v4 = vld [vmem:[#allocation5 + $0x304] ss:$48 sps:$4 sm:$0xff]   ;;  %v5901_v16 = vld [vmem:[#allocation5 + $0x84c] ss:$48 sps:$4 sm:$0xff]  }
  0x5a   :  { %v5889_v7 = vld [vmem:[#allocation5 + $0x300] ss:$48 sps:$4 sm:$0xff]   ;;  %v5896_v17 = vld [vmem:[#allocation5 + $0x548] ss:$48 sps:$4 sm:$0xff]   ;;  %v5904_v19 = vld [vmem:[#allocation5 + $0x4ec] ss:$48 sps:$4 sm:$0xff]  }
  0x5b   :  { %1900 = vmatpush1.bf16.msra.mxu0 %v5834_v27  ;;  %v86_v8 = vld [vmem:[#allocation2] sm:$0xff]  ;;  %v5899_v18 = vld [vmem:[#allocation5 + $0x848] ss:$48 sps:$4 sm:$0xff]   ;;  %v5907_v20 = vld [vmem:[#allocation5 + $0x7ec] ss:$48 sps:$4 sm:$0xff]  }
  0x5c   :  { %1943 = vmatpush1.bf16.msra.mxu1 %v5835_v28  ;;  %1901 = vmatprep.subr.bf16.mxu0 %v5836_v29  ;;  %v6856_v12 = vpack.c.bf16 %v89_v9, %v86_v8  ;;  %v5902_v21 = vld [vmem:[#allocation5 + $0x4e8] ss:$48 sps:$4 sm:$0xff]   ;;  %v5910_v23 = vld [vmem:[#allocation5 + $0x48c] ss:$48 sps:$4 sm:$0xff]   ;;  %v5944_v50 = vld [vmem:[#allocation5 + $0x250] ss:$48 sps:$4 sm:$0xff]  }
  0x5d   :  { %1944 = vmatprep.subr.bf16.mxu1 %v5838_v30  ;;  %v5905_v22 = vld [vmem:[#allocation5 + $0x7e8] ss:$48 sps:$4 sm:$0xff]   ;;  %v5913_v24 = vld [vmem:[#allocation5 + $0x78c] ss:$48 sps:$4 sm:$0xff]   ;;  %v5947_v51 = vld [vmem:[#allocation5 + $0x850] ss:$48 sps:$4 sm:$0xff]  }
  0x5e   :  { %v5908_v25 = vld [vmem:[#allocation5 + $0x488] ss:$48 sps:$4 sm:$0xff]   ;;  %v5916_v27 = vld [vmem:[#allocation5 + $0x42c] ss:$48 sps:$4 sm:$0xff]   ;;  %v5974_v8 = vld [vmem:[#allocation5 + $0x70] ss:$48 sps:$4 sm:$0xff]  }
  0x5f   :  { %1902 = vmatpush1.bf16.msra.mxu0 %v5840_v31  ;;  %v5911_v26 = vld [vmem:[#allocation5 + $0x788] ss:$48 sps:$4 sm:$0xff]   ;;  %v5919_v28 = vld [vmem:[#allocation5 + $0x72c] ss:$48 sps:$4 sm:$0xff]   ;;  %v5977_v9 = vld [vmem:[#allocation5 + $0x670] ss:$48 sps:$4 sm:$0xff]  }
  0x60   :  { %1945 = vmatpush1.bf16.msra.mxu1 %v5841_v32  ;;  %1903 = vmatprep.subr.bf16.mxu0 %v5842_v35  ;;  %v5914_v29 = vld [vmem:[#allocation5 + $0x428] ss:$48 sps:$4 sm:$0xff]   ;;  %v5922_v31 = vld [vmem:[#allocation5 + $0x3cc] ss:$48 sps:$4 sm:$0xff]  }
  0x61   :  { %1973 = vmatprep.subr.bf16.mxu1 %v5846_v36  ;;  %v5917_v30 = vld [vmem:[#allocation5 + $0x728] ss:$48 sps:$4 sm:$0xff]   ;;  %v5925_v32 = vld [vmem:[#allocation5 + $0x6cc] ss:$48 sps:$4 sm:$0xff]  }
  0x62   :  { %v5920_v33 = vld [vmem:[#allocation5 + $0x3c8] ss:$48 sps:$4 sm:$0xff]   ;;  %v5928_v35 = vld [vmem:[#allocation5 + $0x36c] ss:$48 sps:$4 sm:$0xff]  }
  0x63   :  { %1963 = vmatmul.mubr.bf16.vlgmr.msra.gmra.mxu1 %v6849_v37  ;;  %1904 = vmatpush2.bf16.msra.mxu0 %v5847_v39  ;;  %v5923_v34 = vld [vmem:[#allocation5 + $0x6c8] ss:$48 sps:$4 sm:$0xff]   ;;  %v5931_v36 = vld [vmem:[#allocation5 + $0x66c] ss:$48 sps:$4 sm:$0xff]  }
  0x64   :  { %1974 = vmatpush1.bf16.msra.mxu1 %v5844_v38  ;;  %1905 = vmatprep.subr.bf16.mxu0 %v5848_v40  ;;  %v5926_v38 = vld [vmem:[#allocation5 + $0x368] ss:$48 sps:$4 sm:$0xff]   ;;  %v5934_v40 = vld [vmem:[#allocation5 + $0x30c] ss:$48 sps:$4 sm:$0xff]  }
  0x65   :  { %1975 = vmatprep.subr.bf16.mxu1 %v5852_v41  ;;  %2005 = vmatprep.mubr.bf16.mxu1 %v6852_v54  ;;  %v5929_v39 = vld [vmem:[#allocation5 + $0x668] ss:$48 sps:$4 sm:$0xff]   ;;  %v5937_v41 = vld [vmem:[#allocation5 + $0x60c] ss:$48 sps:$4 sm:$0xff]  }
  0x67   :  { %1906 = vmatpush2.bf16.msra.mxu0 %v5853_v43  ;;  %v5935_v43 = vld [vmem:[#allocation5 + $0x608] ss:$48 sps:$4 sm:$0xff]  }
  0x68   :  { %1976 = vmatpush1.bf16.msra.mxu1 %v5850_v42  ;;  %1907 = vmatprep.subr.bf16.mxu0 %v5854_v44  ;;  %v5932_v42 = vld [vmem:[#allocation5 + $0x308] ss:$48 sps:$4 sm:$0xff]   ;;  %v5940_v44 = vld [vmem:[#allocation5 + $0x2b4] ss:$48 sps:$4 sm:$0xff]  }
  0x69   :  { %1977 = vmatprep.subr.bf16.mxu1 %v5858_v45  ;;  %v5943_v45 = vld [vmem:[#allocation5 + $0x8b4] ss:$48 sps:$4 sm:$0xff]  }
  0x6b   :  { %1908 = vmatpush2.bf16.msra.mxu0 %v5859_v47  ;;  %v5941_v47 = vld [vmem:[#allocation5 + $0x8b0] ss:$48 sps:$4 sm:$0xff]  }
  0x6c   :  { %1978 = vmatpush1.bf16.msra.mxu1 %v5856_v46  ;;  %1909 = vmatprep.subr.bf16.mxu0 %v5860_v48  ;;  %v5938_v46 = vld [vmem:[#allocation5 + $0x2b0] ss:$48 sps:$4 sm:$0xff]   ;;  %v5946_v48 = vld [vmem:[#allocation5 + $0x254] ss:$48 sps:$4 sm:$0xff]  }
  0x6d   :  { %1979 = vmatprep.subr.bf16.mxu1 %v5864_v49  ;;  %v5949_v49 = vld [vmem:[#allocation5 + $0x854] ss:$48 sps:$4 sm:$0xff]  }
  0x6f   :  { %1910 = vmatpush2.bf16.msra.mxu0 %v5865_v53  ;;  %v5955_v53 = vld [vmem:[#allocation5 + $0x7f4] ss:$48 sps:$4 sm:$0xff]  }
  0x70   :  { %1980 = vmatpush1.bf16.msra.mxu1 %v5862_v52  ;;  %1911 = vmatprep.subr.bf16.mxu0 %v5866_v55  ;;  %v5952_v52 = vld [vmem:[#allocation5 + $0x1f4] ss:$48 sps:$4 sm:$0xff]   ;;  %v5950_v55 = vld [vmem:[#allocation5 + $0x1f0] ss:$48 sps:$4 sm:$0xff]  }
  0x71   :  { %1981 = vmatprep.subr.bf16.mxu1 %v5870_v56  ;;  %v5953_v56 = vld [vmem:[#allocation5 + $0x7f0] ss:$48 sps:$4 sm:$0xff]  }
  0x73   :  { %1912 = vmatpush2.bf16.msra.mxu0 %v5871_v58  ;;  %v5961_v58 = vld [vmem:[#allocation5 + $0x794] ss:$48 sps:$4 sm:$0xff]  }
  0x74   :  { %1982 = vmatpush1.bf16.msra.mxu1 %v5868_v57  ;;  %1913 = vmatprep.subr.bf16.mxu0 %v5872_v59  ;;  %v5958_v57 = vld [vmem:[#allocation5 + $0x194] ss:$48 sps:$4 sm:$0xff]   ;;  %v5956_v59 = vld [vmem:[#allocation5 + $0x190] ss:$48 sps:$4 sm:$0xff]  }
  0x75   :  { %1983 = vmatprep.subr.bf16.mxu1 %v5876_v60  ;;  %v5959_v60 = vld [vmem:[#allocation5 + $0x790] ss:$48 sps:$4 sm:$0xff]  }
  0x77   :  { %1914 = vmatpush2.bf16.msra.mxu0 %v5877_v62  ;;  %v5967_v62 = vld [vmem:[#allocation5 + $0x734] ss:$48 sps:$4 sm:$0xff]  }
  0x78   :  { %1984 = vmatpush1.bf16.msra.mxu1 %v5874_v61  ;;  %1915 = vmatprep.subr.bf16.mxu0 %v5878_v63  ;;  %v5964_v61 = vld [vmem:[#allocation5 + $0x134] ss:$48 sps:$4 sm:$0xff]   ;;  %v5962_v63 = vld [vmem:[#allocation5 + $0x130] ss:$48 sps:$4 sm:$0xff]  }
  0x79   :  { %1985 = vmatprep.subr.bf16.mxu1 %v5882_v1  ;;  %v5965_v1 = vld [vmem:[#allocation5 + $0x730] ss:$48 sps:$4 sm:$0xff]  }
  0x7b   :  { %1916 = vmatpush2.bf16.msra.mxu0 %v5883_v3  ;;  %v5973_v3 = vld [vmem:[#allocation5 + $0x6d4] ss:$48 sps:$4 sm:$0xff]  }
  0x7c   :  { %1986 = vmatpush1.bf16.msra.mxu1 %v5880_v2  ;;  %1917 = vmatprep.subr.bf16.mxu0 %v5884_v4  ;;  %v5970_v2 = vld [vmem:[#allocation5 + $0xd4] ss:$48 sps:$4 sm:$0xff]   ;;  %v5968_v4 = vld [vmem:[#allocation5 + $0xd0] ss:$48 sps:$4 sm:$0xff]  }
  0x7d   :  { %1987 = vmatprep.subr.bf16.mxu1 %v5888_v5  ;;  %v5971_v5 = vld [vmem:[#allocation5 + $0x6d0] ss:$48 sps:$4 sm:$0xff]  }
  0x7f   :  { %1918 = vmatpush2.bf16.msra.mxu0 %v5889_v7  ;;  %v5979_v7 = vld [vmem:[#allocation5 + $0x674] ss:$48 sps:$4 sm:$0xff]  }
  0x80   :  { %1988 = vmatpush1.bf16.msra.mxu1 %v5886_v6  ;;  %2016 = vmatprep.subr.bf16.mxu0 %v5895_v11  ;;  %v5976_v6 = vld [vmem:[#allocation5 + $0x74] ss:$48 sps:$4 sm:$0xff]  }
  0x81   :  { %1989 = vmatprep.subr.bf16.mxu1 %v5892_v10  ;;  %v5982_v10 = vld [vmem:[#allocation5 + $0x14] ss:$48 sps:$4 sm:$0xff]  }
  0x82   :  { %1920 = vmatmul.mubr.bf16.vlgmr.msra.gmra.mxu0 %v6856_v12  ;;  %v5985_v11 = vld [vmem:[#allocation5 + $0x614] ss:$48 sps:$4 sm:$0xff]  }
  0x83   :  { %2017 = vmatpush1.bf16.msra.mxu0 %v5893_v14  ;;  %2048 = vmatprep.mubr.bf16.mxu0 %v6798_v0  ;;  %v5983_v14 = vld [vmem:[#allocation5 + $0x610] ss:$48 sps:$4 sm:$0xff]  }
  0x84   :  { %1990 = vmatpush2.bf16.msra.mxu1 %v5890_v13  ;;  %2018 = vmatprep.subr.bf16.mxu0 %v5901_v16  ;;  %v5980_v13 = vld [vmem:[#allocation5 + $0x10] ss:$48 sps:$4 sm:$0xff]   ;;  %v5991_v16 = vld [vmem:[#allocation5 + $0x2bc] ss:$48 sps:$4 sm:$0xff]  }
  0x85   :  { %1991 = vmatprep.subr.bf16.mxu1 %v5898_v15  ;;  %v5988_v15 = vld [vmem:[#allocation5 + $0x5b4] ss:$48 sps:$4 sm:$0xff]  }
  0x87   :  { %2019 = vmatpush1.bf16.msra.mxu0 %v5899_v18  ;;  %v5989_v18 = vld [vmem:[#allocation5 + $0x2b8] ss:$48 sps:$4 sm:$0xff]  }
  0x88   :  { %1992 = vmatpush2.bf16.msra.mxu1 %v5896_v17  ;;  %2020 = vmatprep.subr.bf16.mxu0 %v5907_v20  ;;  %v5986_v17 = vld [vmem:[#allocation5 + $0x5b0] ss:$48 sps:$4 sm:$0xff]   ;;  %v5997_v20 = vld [vmem:[#allocation5 + $0x25c] ss:$48 sps:$4 sm:$0xff]  }
  0x89   :  { %1993 = vmatprep.subr.bf16.mxu1 %v5904_v19  ;;  %v5994_v19 = vld [vmem:[#allocation5 + $0x554] ss:$48 sps:$4 sm:$0xff]  }
  0x8b   :  { %2021 = vmatpush1.bf16.msra.mxu0 %v5905_v22  ;;  %v5995_v22 = vld [vmem:[#allocation5 + $0x258] ss:$48 sps:$4 sm:$0xff]  }
  0x8c   :  { %1994 = vmatpush2.bf16.msra.mxu1 %v5902_v21  ;;  %2022 = vmatprep.subr.bf16.mxu0 %v5913_v24  ;;  %v5992_v21 = vld [vmem:[#allocation5 + $0x550] ss:$48 sps:$4 sm:$0xff]   ;;  %v6003_v24 = vld [vmem:[#allocation5 + $0x1fc] ss:$48 sps:$4 sm:$0xff]  }
  0x8d   :  { %1995 = vmatprep.subr.bf16.mxu1 %v5910_v23  ;;  %v6000_v23 = vld [vmem:[#allocation5 + $0x4f4] ss:$48 sps:$4 sm:$0xff]  }
  0x8f   :  { %2023 = vmatpush1.bf16.msra.mxu0 %v5911_v26  ;;  %v6001_v26 = vld [vmem:[#allocation5 + $0x1f8] ss:$48 sps:$4 sm:$0xff]  }
  0x90   :  { %1996 = vmatpush2.bf16.msra.mxu1 %v5908_v25  ;;  %2024 = vmatprep.subr.bf16.mxu0 %v5919_v28  ;;  %v5998_v25 = vld [vmem:[#allocation5 + $0x4f0] ss:$48 sps:$4 sm:$0xff]   ;;  %v6009_v28 = vld [vmem:[#allocation5 + $0x19c] ss:$48 sps:$4 sm:$0xff]  }
  0x91   :  { %1997 = vmatprep.subr.bf16.mxu1 %v5916_v27  ;;  %v6006_v27 = vld [vmem:[#allocation5 + $0x494] ss:$48 sps:$4 sm:$0xff]  }
  0x93   :  { %2025 = vmatpush1.bf16.msra.mxu0 %v5917_v30  ;;  %v6007_v30 = vld [vmem:[#allocation5 + $0x198] ss:$48 sps:$4 sm:$0xff]  }
  0x94   :  { %1998 = vmatpush2.bf16.msra.mxu1 %v5914_v29  ;;  %2026 = vmatprep.subr.bf16.mxu0 %v5925_v32  ;;  %v6004_v29 = vld [vmem:[#allocation5 + $0x490] ss:$48 sps:$4 sm:$0xff]   ;;  %v6015_v32 = vld [vmem:[#allocation5 + $0x13c] ss:$48 sps:$4 sm:$0xff]  }
  0x95   :  { %1999 = vmatprep.subr.bf16.mxu1 %v5922_v31  ;;  %v6012_v31 = vld [vmem:[#allocation5 + $0x434] ss:$48 sps:$4 sm:$0xff]  }
  0x97   :  { %2027 = vmatpush1.bf16.msra.mxu0 %v5923_v34  ;;  %v6013_v34 = vld [vmem:[#allocation5 + $0x138] ss:$48 sps:$4 sm:$0xff]  }
  0x98   :  { %2000 = vmatpush2.bf16.msra.mxu1 %v5920_v33  ;;  %2028 = vmatprep.subr.bf16.mxu0 %v5931_v36  ;;  %v6010_v33 = vld [vmem:[#allocation5 + $0x430] ss:$48 sps:$4 sm:$0xff]   ;;  %v6021_v36 = vld [vmem:[#allocation5 + $0xdc] ss:$48 sps:$4 sm:$0xff]  }
  0x99   :  { %2001 = vmatprep.subr.bf16.mxu1 %v5928_v35  ;;  %v6018_v35 = vld [vmem:[#allocation5 + $0x3d4] ss:$48 sps:$4 sm:$0xff]  }
  0x9b   :  { %2029 = vmatpush1.bf16.msra.mxu0 %v5929_v39  ;;  %v6019_v39 = vld [vmem:[#allocation5 + $0xd8] ss:$48 sps:$4 sm:$0xff]  }
  0x9c   :  { %2002 = vmatpush2.bf16.msra.mxu1 %v5926_v38  ;;  %2030 = vmatprep.subr.bf16.mxu0 %v5937_v41  ;;  %v6016_v38 = vld [vmem:[#allocation5 + $0x3d0] ss:$48 sps:$4 sm:$0xff]   ;;  %v6027_v41 = vld [vmem:[#allocation5 + $0x7c] ss:$48 sps:$4 sm:$0xff]  }
  0x9d   :  { %2003 = vmatprep.subr.bf16.mxu1 %v5934_v40  ;;  %v6024_v40 = vld [vmem:[#allocation5 + $0x374] ss:$48 sps:$4 sm:$0xff]  }
  0x9f   :  { %2031 = vmatpush1.bf16.msra.mxu0 %v5935_v43  ;;  %v6025_v43 = vld [vmem:[#allocation5 + $0x78] ss:$48 sps:$4 sm:$0xff]  }
  0xa0   :  { %2004 = vmatpush2.bf16.msra.mxu1 %v5932_v42  ;;  %2059 = vmatprep.subr.bf16.mxu0 %v5940_v44  ;;  %v6022_v42 = vld [vmem:[#allocation5 + $0x370] ss:$48 sps:$4 sm:$0xff]   ;;  %v6030_v44 = vld [vmem:[#allocation5 + $0x314] ss:$48 sps:$4 sm:$0xff]  }
  0xa1   :  { %2102 = vmatprep.subr.bf16.mxu1 %v5943_v45  ;;  %v6033_v45 = vld [vmem:[#allocation5 + $0x1c] ss:$48 sps:$4 sm:$0xff]  }
  0xa2   :  { %2049 = vmatmul.mubr.bf16.vlgmr.msra.gmra.mxu0 %v6849_v37 }
  0xa3   :  { %2006 = vmatmul.mubr.bf16.vlgmr.msra.gmra.mxu1 %v6856_v12  ;;  %2060 = vmatpush1.bf16.msra.mxu0 %v5938_v46  ;;  %v6028_v46 = vld [vmem:[#allocation5 + $0x310] ss:$48 sps:$4 sm:$0xff]  }
  0xa4   :  { %2103 = vmatpush1.bf16.msra.mxu1 %v5941_v47  ;;  %2061 = vmatprep.subr.bf16.mxu0 %v5946_v48  ;;  %v6031_v47 = vld [vmem:[#allocation5 + $0x18] ss:$48 sps:$4 sm:$0xff]   ;;  %v6036_v48 = vld [vmem:[#allocation5 + $0x5bc] ss:$48 sps:$4 sm:$0xff]  }
  0xa5   :  { %2104 = vmatprep.subr.bf16.mxu1 %v5949_v49  ;;  %2134 = vmatprep.mubr.bf16.mxu1 %v6798_v0  ;;  %v6039_v49 = vld [vmem:[#allocation5 + $0x8bc] ss:$48 sps:$4 sm:$0xff]  }
  0xa6   :  { %2091 = vmatprep.mubr.bf16.mxu0 %v6852_v54 }
  0xa7   :  { %2062 = vmatpush1.bf16.msra.mxu0 %v5944_v50  ;;  %v6034_v50 = vld [vmem:[#allocation5 + $0x5b8] ss:$48 sps:$4 sm:$0xff]  }
  0xa8   :  { %2105 = vmatpush1.bf16.msra.mxu1 %v5947_v51  ;;  %2063 = vmatprep.subr.bf16.mxu0 %v5952_v52  ;;  %v6037_v51 = vld [vmem:[#allocation5 + $0x8b8] ss:$48 sps:$4 sm:$0xff]   ;;  %v6042_v52 = vld [vmem:[#allocation5 + $0x55c] ss:$48 sps:$4 sm:$0xff]  }
  0xa9   :  { %2106 = vmatprep.subr.bf16.mxu1 %v5955_v53  ;;  %v6045_v53 = vld [vmem:[#allocation5 + $0x85c] ss:$48 sps:$4 sm:$0xff]  }
  0xab   :  { %2064 = vmatpush1.bf16.msra.mxu0 %v5950_v55  ;;  %v6040_v55 = vld [vmem:[#allocation5 + $0x558] ss:$48 sps:$4 sm:$0xff]  }
  0xac   :  { %2107 = vmatpush1.bf16.msra.mxu1 %v5953_v56  ;;  %2065 = vmatprep.subr.bf16.mxu0 %v5958_v57  ;;  %v6043_v56 = vld [vmem:[#allocation5 + $0x858] ss:$48 sps:$4 sm:$0xff]   ;;  %v6048_v57 = vld [vmem:[#allocation5 + $0x4fc] ss:$48 sps:$4 sm:$0xff]  }
  0xad   :  { %2108 = vmatprep.subr.bf16.mxu1 %v5961_v58  ;;  %v6051_v58 = vld [vmem:[#allocation5 + $0x7fc] ss:$48 sps:$4 sm:$0xff]  }
  0xaf   :  { %2066 = vmatpush1.bf16.msra.mxu0 %v5956_v59  ;;  %v6046_v59 = vld [vmem:[#allocation5 + $0x4f8] ss:$48 sps:$4 sm:$0xff]  }
  0xb0   :  { %2109 = vmatpush1.bf16.msra.mxu1 %v5959_v60  ;;  %2067 = vmatprep.subr.bf16.mxu0 %v5964_v61  ;;  %v6049_v60 = vld [vmem:[#allocation5 + $0x7f8] ss:$48 sps:$4 sm:$0xff]   ;;  %v6054_v61 = vld [vmem:[#allocation5 + $0x49c] ss:$48 sps:$4 sm:$0xff]  }
  0xb1   :  { %2110 = vmatprep.subr.bf16.mxu1 %v5967_v62  ;;  %v6057_v62 = vld [vmem:[#allocation5 + $0x79c] ss:$48 sps:$4 sm:$0xff]  }
  0xb3   :  { %2068 = vmatpush1.bf16.msra.mxu0 %v5962_v63  ;;  %v6052_v63 = vld [vmem:[#allocation5 + $0x498] ss:$48 sps:$4 sm:$0xff]  }
  0xb4   :  { %2111 = vmatpush1.bf16.msra.mxu1 %v5965_v1  ;;  %2069 = vmatprep.subr.bf16.mxu0 %v5970_v2  ;;  %v6055_v1 = vld [vmem:[#allocation5 + $0x798] ss:$48 sps:$4 sm:$0xff]   ;;  %v6060_v2 = vld [vmem:[#allocation5 + $0x43c] ss:$48 sps:$4 sm:$0xff]  }
  0xb5   :  { %2112 = vmatprep.subr.bf16.mxu1 %v5973_v3  ;;  %v6063_v3 = vld [vmem:[#allocation5 + $0x73c] ss:$48 sps:$4 sm:$0xff]  }
  0xb7   :  { %2070 = vmatpush1.bf16.msra.mxu0 %v5968_v4  ;;  %v6058_v4 = vld [vmem:[#allocation5 + $0x438] ss:$48 sps:$4 sm:$0xff]  }
  0xb8   :  { %2113 = vmatpush1.bf16.msra.mxu1 %v5971_v5  ;;  %2071 = vmatprep.subr.bf16.mxu0 %v5976_v6  ;;  %v6061_v5 = vld [vmem:[#allocation5 + $0x738] ss:$48 sps:$4 sm:$0xff]   ;;  %v6066_v6 = vld [vmem:[#allocation5 + $0x3dc] ss:$48 sps:$4 sm:$0xff]  }
  0xb9   :  { %2114 = vmatprep.subr.bf16.mxu1 %v5979_v7  ;;  %v6069_v7 = vld [vmem:[#allocation5 + $0x6dc] ss:$48 sps:$4 sm:$0xff]  }
  0xbb   :  { %2072 = vmatpush1.bf16.msra.mxu0 %v5974_v8  ;;  %v6064_v8 = vld [vmem:[#allocation5 + $0x3d8] ss:$48 sps:$4 sm:$0xff]  }
  0xbc   :  { %2115 = vmatpush1.bf16.msra.mxu1 %v5977_v9  ;;  %2073 = vmatprep.subr.bf16.mxu0 %v5982_v10  ;;  %v6067_v9 = vld [vmem:[#allocation5 + $0x6d8] ss:$48 sps:$4 sm:$0xff]   ;;  %v6072_v10 = vld [vmem:[#allocation5 + $0x37c] ss:$48 sps:$4 sm:$0xff]  }
  0xbd   :  { %2116 = vmatprep.subr.bf16.mxu1 %v5985_v11  ;;  %v6075_v11 = vld [vmem:[#allocation5 + $0x67c] ss:$48 sps:$4 sm:$0xff]  }
  0xbf   :  { %2074 = vmatpush1.bf16.msra.mxu0 %v5980_v13  ;;  %v6070_v13 = vld [vmem:[#allocation5 + $0x378] ss:$48 sps:$4 sm:$0xff]  }
  0xc0   :  { %2117 = vmatpush1.bf16.msra.mxu1 %v5983_v14  ;;  %2075 = vmatprep.subr.bf16.mxu0 %v5988_v15  ;;  %v6073_v14 = vld [vmem:[#allocation5 + $0x678] ss:$48 sps:$4 sm:$0xff]   ;;  %v6078_v15 = vld [vmem:[#allocation5 + $0x31c] ss:$48 sps:$4 sm:$0xff]  }
  0xc1   :  { %2145 = vmatprep.subr.bf16.mxu1 %v5991_v16  ;;  %v6081_v16 = vld [vmem:[#allocation5 + $0x61c] ss:$48 sps:$4 sm:$0xff]  }
  0xc3   :  { %2135 = vmatmul.mubr.bf16.vlgmr.msra.gmra.mxu1 %v6849_v37  ;;  %2076 = vmatpush2.bf16.msra.mxu0 %v5986_v17  ;;  %v6076_v17 = vld [vmem:[#allocation5 + $0x318] ss:$48 sps:$4 sm:$0xff]  }
  0xc4   :  { %2146 = vmatpush1.bf16.msra.mxu1 %v5989_v18  ;;  %2077 = vmatprep.subr.bf16.mxu0 %v5994_v19  ;;  %v6079_v18 = vld [vmem:[#allocation5 + $0x618] ss:$48 sps:$4 sm:$0xff]   ;;  %v6084_v19 = vld [vmem:[#allocation5 + $0x2c4] ss:$48 sps:$4 sm:$0xff]  }
  0xc5   :  { %2147 = vmatprep.subr.bf16.mxu1 %v5997_v20  ;;  %2177 = vmatprep.mubr.bf16.mxu1 %v6852_v54  ;;  %v6087_v20 = vld [vmem:[#allocation5 + $0x8c4] ss:$48 sps:$4 sm:$0xff]  }
  0xc7   :  { %2078 = vmatpush2.bf16.msra.mxu0 %v5992_v21  ;;  %v6082_v21 = vld [vmem:[#allocation5 + $0x2c0] ss:$48 sps:$4 sm:$0xff]  }
  0xc8   :  { %2148 = vmatpush1.bf16.msra.mxu1 %v5995_v22  ;;  %2079 = vmatprep.subr.bf16.mxu0 %v6000_v23  ;;  %v6085_v22 = vld [vmem:[#allocation5 + $0x8c0] ss:$48 sps:$4 sm:$0xff]   ;;  %v6090_v23 = vld [vmem:[#allocation5 + $0x264] ss:$48 sps:$4 sm:$0xff]  }
  0xc9   :  { %2149 = vmatprep.subr.bf16.mxu1 %v6003_v24  ;;  %v6093_v24 = vld [vmem:[#allocation5 + $0x864] ss:$48 sps:$4 sm:$0xff]  }
  0xcb   :  { %2080 = vmatpush2.bf16.msra.mxu0 %v5998_v25  ;;  %v6088_v25 = vld [vmem:[#allocation5 + $0x260] ss:$48 sps:$4 sm:$0xff]  }
  0xcc   :  { %2150 = vmatpush1.bf16.msra.mxu1 %v6001_v26  ;;  %2081 = vmatprep.subr.bf16.mxu0 %v6006_v27  ;;  %v6091_v26 = vld [vmem:[#allocation5 + $0x860] ss:$48 sps:$4 sm:$0xff]   ;;  %v6096_v27 = vld [vmem:[#allocation5 + $0x204] ss:$48 sps:$4 sm:$0xff]  }
  0xcd   :  { %2151 = vmatprep.subr.bf16.mxu1 %v6009_v28  ;;  %v6099_v28 = vld [vmem:[#allocation5 + $0x804] ss:$48 sps:$4 sm:$0xff]  }
  0xcf   :  { %2082 = vmatpush2.bf16.msra.mxu0 %v6004_v29  ;;  %v6094_v29 = vld [vmem:[#allocation5 + $0x200] ss:$48 sps:$4 sm:$0xff]  }
  0xd0   :  { %2152 = vmatpush1.bf16.msra.mxu1 %v6007_v30  ;;  %2083 = vmatprep.subr.bf16.mxu0 %v6012_v31  ;;  %v6097_v30 = vld [vmem:[#allocation5 + $0x800] ss:$48 sps:$4 sm:$0xff]   ;;  %v6102_v31 = vld [vmem:[#allocation5 + $0x1a4] ss:$48 sps:$4 sm:$0xff]  }
  0xd1   :  { %2153 = vmatprep.subr.bf16.mxu1 %v6015_v32  ;;  %v6105_v32 = vld [vmem:[#allocation5 + $0x7a4] ss:$48 sps:$4 sm:$0xff]  }
  0xd3   :  { %2084 = vmatpush2.bf16.msra.mxu0 %v6010_v33  ;;  %v6100_v33 = vld [vmem:[#allocation5 + $0x1a0] ss:$48 sps:$4 sm:$0xff]  }
  0xd4   :  { %2154 = vmatpush1.bf16.msra.mxu1 %v6013_v34  ;;  %2085 = vmatprep.subr.bf16.mxu0 %v6018_v35  ;;  %v6103_v34 = vld [vmem:[#allocation5 + $0x7a0] ss:$48 sps:$4 sm:$0xff]   ;;  %v6108_v35 = vld [vmem:[#allocation5 + $0x144] ss:$48 sps:$4 sm:$0xff]  }
  0xd5   :  { %2155 = vmatprep.subr.bf16.mxu1 %v6021_v36  ;;  %v6111_v36 = vld [vmem:[#allocation5 + $0x744] ss:$48 sps:$4 sm:$0xff]  }
  0xd7   :  { %2086 = vmatpush2.bf16.msra.mxu0 %v6016_v38  ;;  %v6106_v38 = vld [vmem:[#allocation5 + $0x140] ss:$48 sps:$4 sm:$0xff]  }
  0xd8   :  { %2156 = vmatpush1.bf16.msra.mxu1 %v6019_v39  ;;  %2087 = vmatprep.subr.bf16.mxu0 %v6024_v40  ;;  %v6109_v39 = vld [vmem:[#allocation5 + $0x740] ss:$48 sps:$4 sm:$0xff]   ;;  %v6114_v40 = vld [vmem:[#allocation5 + $0xe4] ss:$48 sps:$4 sm:$0xff]  }
  0xd9   :  { %2157 = vmatprep.subr.bf16.mxu1 %v6027_v41  ;;  %v6117_v41 = vld [vmem:[#allocation5 + $0x6e4] ss:$48 sps:$4 sm:$0xff]  }
  0xdb   :  { %2088 = vmatpush2.bf16.msra.mxu0 %v6022_v42  ;;  %v6112_v42 = vld [vmem:[#allocation5 + $0xe0] ss:$48 sps:$4 sm:$0xff]  }
  0xdc   :  { %2158 = vmatpush1.bf16.msra.mxu1 %v6025_v43  ;;  %2089 = vmatprep.subr.bf16.mxu0 %v6030_v44  ;;  %v6115_v43 = vld [vmem:[#allocation5 + $0x6e0] ss:$48 sps:$4 sm:$0xff]   ;;  %v6120_v44 = vld [vmem:[#allocation5 + $0x84] ss:$48 sps:$4 sm:$0xff]  }
  0xdd   :  { %2159 = vmatprep.subr.bf16.mxu1 %v6033_v45  ;;  %v6123_v45 = vld [vmem:[#allocation5 + $0x684] ss:$48 sps:$4 sm:$0xff]  }
  0xdf   :  { %2090 = vmatpush2.bf16.msra.mxu0 %v6028_v46  ;;  %v6118_v46 = vld [vmem:[#allocation5 + $0x80] ss:$48 sps:$4 sm:$0xff]  }
  0xe0   :  { %2160 = vmatpush1.bf16.msra.mxu1 %v6031_v47  ;;  %2188 = vmatprep.subr.bf16.mxu0 %v6039_v49  ;;  %v6121_v47 = vld [vmem:[#allocation5 + $0x680] ss:$48 sps:$4 sm:$0xff]   ;;  %v6129_v49 = vld [vmem:[#allocation5 + $0x624] ss:$48 sps:$4 sm:$0xff]  }
  0xe1   :  { %2161 = vmatprep.subr.bf16.mxu1 %v6036_v48  ;;  %v6126_v48 = vld [vmem:[#allocation5 + $0x24] ss:$48 sps:$4 sm:$0xff]  }
  0xe2   :  { %2092 = vmatmul.mubr.bf16.vlgmr.msra.gmra.mxu0 %v6856_v12 }
  0xe3   :  { %2189 = vmatpush1.bf16.msra.mxu0 %v6037_v51  ;;  %2220 = vmatprep.mubr.bf16.mxu0 %v6798_v0  ;;  %v6127_v51 = vld [vmem:[#allocation5 + $0x620] ss:$48 sps:$4 sm:$0xff]  }
  0xe4   :  { %2162 = vmatpush2.bf16.msra.mxu1 %v6034_v50  ;;  %2190 = vmatprep.subr.bf16.mxu0 %v6045_v53  ;;  %v6124_v50 = vld [vmem:[#allocation5 + $0x20] ss:$48 sps:$4 sm:$0xff]   ;;  %v6135_v53 = vld [vmem:[#allocation5 + $0x2cc] ss:$48 sps:$4 sm:$0xff]  }
  0xe5   :  { %2163 = vmatprep.subr.bf16.mxu1 %v6042_v52  ;;  %v6132_v52 = vld [vmem:[#allocation5 + $0x5c4] ss:$48 sps:$4 sm:$0xff]  }
  0xe7   :  { %2191 = vmatpush1.bf16.msra.mxu0 %v6043_v56  ;;  %v6133_v56 = vld [vmem:[#allocation5 + $0x2c8] ss:$48 sps:$4 sm:$0xff]  }
  0xe8   :  { %2164 = vmatpush2.bf16.msra.mxu1 %v6040_v55  ;;  %2192 = vmatprep.subr.bf16.mxu0 %v6051_v58  ;;  %v6130_v55 = vld [vmem:[#allocation5 + $0x5c0] ss:$48 sps:$4 sm:$0xff]   ;;  %v6141_v58 = vld [vmem:[#allocation5 + $0x26c] ss:$48 sps:$4 sm:$0xff]  }
  0xe9   :  { %2165 = vmatprep.subr.bf16.mxu1 %v6048_v57  ;;  %v6138_v57 = vld [vmem:[#allocation5 + $0x564] ss:$48 sps:$4 sm:$0xff]  }
  0xeb   :  { %2193 = vmatpush1.bf16.msra.mxu0 %v6049_v60  ;;  %v6139_v60 = vld [vmem:[#allocation5 + $0x268] ss:$48 sps:$4 sm:$0xff]  }
  0xec   :  { %2166 = vmatpush2.bf16.msra.mxu1 %v6046_v59  ;;  %2194 = vmatprep.subr.bf16.mxu0 %v6057_v62  ;;  %v6136_v59 = vld [vmem:[#allocation5 + $0x560] ss:$48 sps:$4 sm:$0xff]   ;;  %v6147_v62 = vld [vmem:[#allocation5 + $0x20c] ss:$48 sps:$4 sm:$0xff]  }
  0xed   :  { %2167 = vmatprep.subr.bf16.mxu1 %v6054_v61  ;;  %v6144_v61 = vld [vmem:[#allocation5 + $0x504] ss:$48 sps:$4 sm:$0xff]  }
  0xef   :  { %2195 = vmatpush1.bf16.msra.mxu0 %v6055_v1  ;;  %v6145_v1 = vld [vmem:[#allocation5 + $0x208] ss:$48 sps:$4 sm:$0xff]  }
  0xf0   :  { %2168 = vmatpush2.bf16.msra.mxu1 %v6052_v63  ;;  %2196 = vmatprep.subr.bf16.mxu0 %v6063_v3  ;;  %v6142_v63 = vld [vmem:[#allocation5 + $0x500] ss:$48 sps:$4 sm:$0xff]   ;;  %v6153_v3 = vld [vmem:[#allocation5 + $0x1ac] ss:$48 sps:$4 sm:$0xff]  }
  0xf1   :  { %2169 = vmatprep.subr.bf16.mxu1 %v6060_v2  ;;  %v6150_v2 = vld [vmem:[#allocation5 + $0x4a4] ss:$48 sps:$4 sm:$0xff]  }
  0xf3   :  { %2197 = vmatpush1.bf16.msra.mxu0 %v6061_v5  ;;  %v6151_v5 = vld [vmem:[#allocation5 + $0x1a8] ss:$48 sps:$4 sm:$0xff]  }
  0xf4   :  { %2170 = vmatpush2.bf16.msra.mxu1 %v6058_v4  ;;  %2198 = vmatprep.subr.bf16.mxu0 %v6069_v7  ;;  %v6148_v4 = vld [vmem:[#allocation5 + $0x4a0] ss:$48 sps:$4 sm:$0xff]   ;;  %v6159_v7 = vld [vmem:[#allocation5 + $0x14c] ss:$48 sps:$4 sm:$0xff]  }
  0xf5   :  { %2171 = vmatprep.subr.bf16.mxu1 %v6066_v6  ;;  %v6156_v6 = vld [vmem:[#allocation5 + $0x444] ss:$48 sps:$4 sm:$0xff]  }
  0xf7   :  { %2199 = vmatpush1.bf16.msra.mxu0 %v6067_v9  ;;  %v6162_v9 = vld [vmem:[#allocation5 + $0x3e4] ss:$48 sps:$4 sm:$0xff]  }
  0xf8   :  { %2172 = vmatpush2.bf16.msra.mxu1 %v6064_v8  ;;  %2200 = vmatprep.subr.bf16.mxu0 %v6075_v11  ;;  %v6154_v8 = vld [vmem:[#allocation5 + $0x440] ss:$48 sps:$4 sm:$0xff]  }
  0xf9   :  { %2173 = vmatprep.subr.bf16.mxu1 %v6072_v10  ;;  %v6165_v10 = vld [vmem:[#allocation5 + $0xec] ss:$48 sps:$4 sm:$0xff]   ;;  %v6160_v11 = vld [vmem:[#allocation5 + $0x3e0] ss:$48 sps:$4 sm:$0xff]  }
  0xfb   :  { %2201 = vmatpush1.bf16.msra.mxu0 %v6073_v14  ;;  %v6168_v14 = vld [vmem:[#allocation5 + $0x384] ss:$48 sps:$4 sm:$0xff]  }
  0xfc   :  { %2174 = vmatpush2.bf16.msra.mxu1 %v6070_v13  ;;  %2202 = vmatprep.subr.bf16.mxu0 %v6081_v16  ;;  %v6163_v13 = vld [vmem:[#allocation5 + $0xe8] ss:$48 sps:$4 sm:$0xff]   ;;  %v6166_v16 = vld [vmem:[#allocation5 + $0x380] ss:$48 sps:$4 sm:$0xff]  }
  0xfd   :  { %2175 = vmatprep.subr.bf16.mxu1 %v6078_v15  ;;  %v6171_v15 = vld [vmem:[#allocation5 + $0x8c] ss:$48 sps:$4 sm:$0xff]  }
  0xff   :  { %2203 = vmatpush1.bf16.msra.mxu0 %v6079_v18  ;;  %v6174_v18 = vld [vmem:[#allocation5 + $0x324] ss:$48 sps:$4 sm:$0xff]  }
 0x100   :  { %2176 = vmatpush2.bf16.msra.mxu1 %v6076_v17  ;;  %2231 = vmatprep.subr.bf16.mxu0 %v6084_v19  ;;  %v6169_v17 = vld [vmem:[#allocation5 + $0x88] ss:$48 sps:$4 sm:$0xff]   ;;  %v387_v19 = vlaneseq }
 0x101   :  { %2274 = vmatprep.subr.bf16.mxu1 %v6087_v20  ;;  %v6177_v20 = vld [vmem:[#allocation5 + $0x2c] ss:$48 sps:$4 sm:$0xff]  }
 0x102   :  { %2221 = vmatmul.mubr.bf16.vlgmr.msra.gmra.mxu0 %v6849_v37 }
 0x103   :  { %2178 = vmatmul.mubr.bf16.vlgmr.msra.gmra.mxu1 %v6856_v12  ;;  %2232 = vmatpush1.bf16.msra.mxu0 %v6082_v21  ;;  %v6172_v21 = vld [vmem:[#allocation5 + $0x320] ss:$48 sps:$4 sm:$0xff]  }
 0x104   :  { %2275 = vmatpush1.bf16.msra.mxu1 %v6085_v22  ;;  %2233 = vmatprep.subr.bf16.mxu0 %v6090_v23  ;;  %v6175_v22 = vld [vmem:[#allocation5 + $0x28] ss:$48 sps:$4 sm:$0xff]   ;;  %v6874_v23 = vshrl.u32 %v387_v19, 7  ;;  %v6226_v19 = vld [vmem:[#allocation8 + $0xa8] ss:$12 sps:$4 sm:$0xff]  }
 0x105   :  { %2276 = vmatprep.subr.bf16.mxu1 %v6093_v24  ;;  %2306 = vmatprep.mubr.bf16.mxu1 %v6798_v0  ;;  %v6180_v24 = vld [vmem:[#allocation5 + $0x5cc] ss:$48 sps:$4 sm:$0xff]  }
 0x106   :  { %2263 = vmatprep.mubr.bf16.mxu0 %v6852_v54 }
 0x107   :  { %2234 = vmatpush1.bf16.msra.mxu0 %v6088_v25  ;;  %v6183_v25 = vld [vmem:[#allocation5 + $0x8cc] ss:$48 sps:$4 sm:$0xff]  }
 0x108   :  { %2277 = vmatpush1.bf16.msra.mxu1 %v6091_v26  ;;  %2235 = vmatprep.subr.bf16.mxu0 %v6096_v27  ;;  %v6178_v26 = vld [vmem:[#allocation5 + $0x5c8] ss:$48 sps:$4 sm:$0xff]  }
 0x109   :  { %2278 = vmatprep.subr.bf16.mxu1 %v6099_v28  ;;  %v6181_v27 = vld [vmem:[#allocation5 + $0x8c8] ss:$48 sps:$4 sm:$0xff]   ;;  %v6877_v28 = vsub.s32 1, %v6874_v23 }
 0x10b   :  { %2236 = vmatpush1.bf16.msra.mxu0 %v6094_v29  ;;  %v6879_v29 = vld [vmem:[#allocation7] sm:$0xff] }
 0x10c   :  { %2279 = vmatpush1.bf16.msra.mxu1 %v6097_v30  ;;  %2237 = vmatprep.subr.bf16.mxu0 %v6102_v31  ;;  %v6186_v30 = vld [vmem:[#allocation5 + $0x56c] ss:$48 sps:$4 sm:$0xff]  }
 0x10d   :  { %2280 = vmatprep.subr.bf16.mxu1 %v6105_v32  ;;  %v6189_v31 = vld [vmem:[#allocation5 + $0x86c] ss:$48 sps:$4 sm:$0xff]  }
 0x10f   :  { %2238 = vmatpush1.bf16.msra.mxu0 %v6100_v33  ;;  %v394_v33 = vrot.slane %v6879_v29, %v6877_v28 }
 0x110   :  { %2281 = vmatpush1.bf16.msra.mxu1 %v6103_v34  ;;  %2239 = vmatprep.subr.bf16.mxu0 %v6108_v35  ;;  %v6184_v34 = vld [vmem:[#allocation5 + $0x568] ss:$48 sps:$4 sm:$0xff]  }
 0x111   :  { %2282 = vmatprep.subr.bf16.mxu1 %v6111_v36  ;;  %v6187_v35 = vld [vmem:[#allocation5 + $0x868] ss:$48 sps:$4 sm:$0xff]  }
 0x113   :  { %2240 = vmatpush1.bf16.msra.mxu0 %v6106_v38  ;;  %v6192_v38 = vld [vmem:[#allocation5 + $0x50c] ss:$48 sps:$4 sm:$0xff]  }
 0x114   :  { %2283 = vmatpush1.bf16.msra.mxu1 %v6109_v39  ;;  %2241 = vmatprep.subr.bf16.mxu0 %v6114_v40  ;;  %v6195_v39 = vld [vmem:[#allocation5 + $0x80c] ss:$48 sps:$4 sm:$0xff]  }
 0x115   :  { %2284 = vmatprep.subr.bf16.mxu1 %v6117_v41 }
 0x117   :  { %2242 = vmatpush1.bf16.msra.mxu0 %v6112_v42 }
 0x118   :  { %2285 = vmatpush1.bf16.msra.mxu1 %v6115_v43  ;;  %2243 = vmatprep.subr.bf16.mxu0 %v6120_v44  ;;  %v6190_v43 = vld [vmem:[#allocation5 + $0x508] ss:$48 sps:$4 sm:$0xff]  }
 0x119   :  { %2286 = vmatprep.subr.bf16.mxu1 %v6123_v45  ;;  %v6193_v44 = vld [vmem:[#allocation5 + $0x808] ss:$48 sps:$4 sm:$0xff]  }
 0x11b   :  { %2244 = vmatpush1.bf16.msra.mxu0 %v6118_v46  ;;  %v6198_v46 = vld [vmem:[#allocation5 + $0x4ac] ss:$48 sps:$4 sm:$0xff]  }
 0x11c   :  { %2287 = vmatpush1.bf16.msra.mxu1 %v6121_v47  ;;  %2245 = vmatprep.subr.bf16.mxu0 %v6126_v48  ;;  %v6201_v47 = vld [vmem:[#allocation5 + $0x7ac] ss:$48 sps:$4 sm:$0xff]  }
 0x11d   :  { %2288 = vmatprep.subr.bf16.mxu1 %v6129_v49 }
 0x11f   :  { %2246 = vmatpush1.bf16.msra.mxu0 %v6124_v50 }
 0x120   :  { %2289 = vmatpush1.bf16.msra.mxu1 %v6127_v51  ;;  %2247 = vmatprep.subr.bf16.mxu0 %v6132_v52 }
 0x121   :  { %2317 = vmatprep.subr.bf16.mxu1 %v6135_v53  ;;  %v6196_v53 = vld [vmem:[#allocation5 + $0x4a8] ss:$48 sps:$4 sm:$0xff]  }
 0x123   :  { %2307 = vmatmul.mubr.bf16.vlgmr.msra.gmra.mxu1 %v6849_v37  ;;  %2248 = vmatpush2.bf16.msra.mxu0 %v6130_v55  ;;  %v6881_v32 = vpop.f32.mrf.mxu1  ;;  %v6199_v55 = vld [vmem:[#allocation5 + $0x7a8] ss:$48 sps:$4 sm:$0xff]  }
 0x124   :  { %2318 = vmatpush1.bf16.msra.mxu1 %v6133_v56  ;;  %2249 = vmatprep.subr.bf16.mxu0 %v6138_v57 }
 0x125   :  { %2319 = vmatprep.subr.bf16.mxu1 %v6141_v58  ;;  %2349 = vmatprep.mubr.bf16.mxu1 %v6852_v54  ;;  %v6157_v54 = vld [vmem:[#allocation5 + $0x148] ss:$48 sps:$4 sm:$0xff]   ;;  %v1966_v40 = vpop.f32.mrf.mxu1  ;;  %v6207_v58 = vld [vmem:[#allocation5 + $0x74c] ss:$48 sps:$4 sm:$0xff]  }
 0x127   :  { %2250 = vmatpush2.bf16.msra.mxu0 %v6136_v59  ;;  %v6891_v48 = vpop.f32.mrf.mxu1 }
 0x128   :  { %2320 = vmatpush1.bf16.msra.mxu1 %v6139_v60  ;;  %2251 = vmatprep.subr.bf16.mxu0 %v6144_v61  ;;  %v6202_v61 = vld [vmem:[#allocation5 + $0x448] ss:$48 sps:$4 sm:$0xff]  }
 0x129   :  { %2321 = vmatprep.subr.bf16.mxu1 %v6147_v62  ;;  %v1970_v56 = vpop.f32.mrf.mxu1 }
 0x12b   :  { %2252 = vmatpush2.bf16.msra.mxu0 %v6142_v63  ;;  %v6205_v63 = vld [vmem:[#allocation5 + $0x748] ss:$48 sps:$4 sm:$0xff]  }
 0x12c   :  { %2322 = vmatpush1.bf16.msra.mxu1 %v6145_v1  ;;  %2253 = vmatprep.subr.bf16.mxu0 %v6150_v2  ;;  %v6210_v1 = vld [vmem:[#allocation5 + $0x3ec] ss:$48 sps:$4 sm:$0xff]  }
 0x12d   :  { %2323 = vmatprep.subr.bf16.mxu1 %v6153_v3  ;;  %v6213_v3 = vld [vmem:[#allocation5 + $0x6ec] ss:$48 sps:$4 sm:$0xff]  }
 0x12f   :  { %2254 = vmatpush2.bf16.msra.mxu0 %v6148_v4 }
 0x130   :  { %2324 = vmatpush1.bf16.msra.mxu1 %v6151_v5  ;;  %2255 = vmatprep.subr.bf16.mxu0 %v6156_v6  ;;  %v6208_v5 = vld [vmem:[#allocation5 + $0x3e8] ss:$48 sps:$4 sm:$0xff]  }
 0x131   :  { %2325 = vmatprep.subr.bf16.mxu1 %v6159_v7  ;;  %v6211_v6 = vld [vmem:[#allocation5 + $0x6e8] ss:$48 sps:$4 sm:$0xff]  }
 0x133   :  { %2256 = vmatpush2.bf16.msra.mxu0 %v6154_v8  ;;  %v6216_v8 = vld [vmem:[#allocation5 + $0x38c] ss:$48 sps:$4 sm:$0xff]  }
 0x134   :  { %2326 = vmatpush1.bf16.msra.mxu1 %v6157_v54  ;;  %2257 = vmatprep.subr.bf16.mxu0 %v6162_v9  ;;  %v6219_v54 = vld [vmem:[#allocation5 + $0x68c] ss:$48 sps:$4 sm:$0xff]  }
 0x135   :  { %2327 = vmatprep.subr.bf16.mxu1 %v6165_v10  ;;  %v6214_v10 = vld [vmem:[#allocation5 + $0x388] ss:$48 sps:$4 sm:$0xff]  }
 0x137   :  { %2258 = vmatpush2.bf16.msra.mxu0 %v6160_v11  ;;  %v6217_v11 = vld [vmem:[#allocation5 + $0x688] ss:$48 sps:$4 sm:$0xff]  }
 0x138   :  { %2328 = vmatpush1.bf16.msra.mxu1 %v6163_v13  ;;  %2259 = vmatprep.subr.bf16.mxu0 %v6168_v14  ;;  %v6222_v13 = vld [vmem:[#allocation5 + $0x32c] ss:$48 sps:$4 sm:$0xff]  }
 0x139   :  { %2329 = vmatprep.subr.bf16.mxu1 %v6171_v15  ;;  %v6225_v14 = vld [vmem:[#allocation5 + $0x62c] ss:$48 sps:$4 sm:$0xff]   ;;  %v6220_v15 = vld [vmem:[#allocation5 + $0x328] ss:$48 sps:$4 sm:$0xff]  }
 0x13b   :  { %2260 = vmatpush2.bf16.msra.mxu0 %v6166_v16  ;;  %v6223_v16 = vld [vmem:[#allocation5 + $0x628] ss:$48 sps:$4 sm:$0xff]  }
 0x13c   :  { %2330 = vmatpush1.bf16.msra.mxu1 %v6169_v17  ;;  %2261 = vmatprep.subr.bf16.mxu0 %v6174_v18  ;;  %v6228_v17 = vld [vmem:[#allocation8 + $0xac] ss:$12 sps:$4 sm:$0xff]  }
 0x13d   :  { %2331 = vmatprep.subr.bf16.mxu1 %v6177_v20  ;;  %v6231_v18 = vld [vmem:[#allocation8 + $0x22c] ss:$12 sps:$4 sm:$0xff]   ;;  %v6229_v20 = vld [vmem:[#allocation8 + $0x228] ss:$12 sps:$4 sm:$0xff]  }
 0x13f   :  { %2262 = vmatpush2.bf16.msra.mxu0 %v6172_v21  ;;  %v401_v21 = vsub.s32 3, %v6874_v23 }
 0x140   :  { %2332 = vmatpush1.bf16.msra.mxu1 %v6175_v22  ;;  %2360 = vmatprep.subr.bf16.mxu0 %v6183_v25  ;;  %v6234_v22 = vld [vmem:[#allocation8 + $0x94] ss:$12 sps:$4 sm:$0xff]  }
 0x141   :  { %2333 = vmatprep.subr.bf16.mxu1 %v6180_v24  ;;  %v6237_v24 = vld [vmem:[#allocation8 + $0x214] ss:$12 sps:$4 sm:$0xff]  }
 0x142   :  { %v6885_v36 = vpop.f32.mrf.mxu0  ;;  %2264 = vmatmul.mubr.bf16.vlgmr.msra.gmra.mxu0 %v6856_v12 }
 0x143   :  { %2361 = vmatpush1.bf16.msra.mxu0 %v6181_v27  ;;  %2392 = vmatprep.mubr.bf16.mxu0 %v6798_v0  ;;  %v6204_v0 = vld [vmem:[#allocation5 + $0x44c] ss:$48 sps:$4 sm:$0xff]   ;;  %v402_v27 = vrot.slane %v6879_v29, %v401_v21 }
 0x144   :  { %2334 = vmatpush2.bf16.msra.mxu1 %v6178_v26  ;;  %v1923_v41 = vpop.f32.mrf.mxu0  ;;  %2362 = vmatprep.subr.bf16.mxu0 %v6189_v31  ;;  %v6905_v26 = vsub.s32 0, %v6874_v23  ;;  %v6235_v31 = vld [vmem:[#allocation8 + $0x210] ss:$12 sps:$4 sm:$0xff]  }
 0x145   :  { %2335 = vmatprep.subr.bf16.mxu1 %v6186_v30  ;;  %v1924_v42 = vadd.f32 %v1923_v41, %v394_v33  ;;  %v6232_v30 = vld [vmem:[#allocation8 + $0x90] ss:$12 sps:$4 sm:$0xff]  }
 0x146   :  { %v6889_v45 = vpop.f32.mrf.mxu0  ;;  %v390_v41 = vrot.slane %v6879_v29, %v6905_v26 }
 0x147   :  { %v6893_v49 = vadd.f32 %v1966_v40, %v1924_v42  ;;  %2363 = vmatpush1.bf16.msra.mxu0 %v6187_v35  ;;  %v6917_v42 = vsub.s32 2, %v6874_v23 }
 0x148   :  { %2336 = vmatpush2.bf16.msra.mxu1 %v6184_v34  ;;  %v1927_v50 = vpop.f32.mrf.mxu0  ;;  %2364 = vmatprep.subr.bf16.mxu0 %v6195_v39  ;;  %v6243_v39 = vld [vmem:[#allocation8 + $0x1fc] ss:$12 sps:$4 sm:$0xff]  }
 0x149   :  { %2337 = vmatprep.subr.bf16.mxu1 %v6192_v38  ;;  %v2404_v51 = vmul.f32 %v6893_v49, %v6893_v49  ;;  %v1928_v52 = vadd.f32 %v1927_v50, %v394_v33  ;;  %v6240_v38 = vld [vmem:[#allocation8 + $0x7c] ss:$12 sps:$4 sm:$0xff]   ;;  %v6238_v50 = vld [vmem:[#allocation8 + $0x78] ss:$12 sps:$4 sm:$0xff]  }
 0x14b   :  { %v2428_v57 = vmul.f32 0.035677407, %v2404_v51  ;;  %2365 = vmatpush1.bf16.msra.mxu0 %v6193_v44  ;;  %v6897_v59 = vadd.f32 %v1970_v56, %v1928_v52  ;;  %v6241_v51 = vld [vmem:[#allocation8 + $0x1f8] ss:$12 sps:$4 sm:$0xff]   ;;  %v1922_v56 = vadd.f32 %v6885_v36, %v390_v41  ;;  %v6244_v36 = vld [vmem:[#allocation8 + $0x60] ss:$12 sps:$4 sm:$0xff]  }
 0x14c   :  { %2338 = vmatpush2.bf16.msra.mxu1 %v6190_v43  ;;  %2366 = vmatprep.subr.bf16.mxu0 %v6201_v47  ;;  %v2524_v43 = vmul.f32 0.5, %v6893_v49 }
 0x14d   :  { %2339 = vmatprep.subr.bf16.mxu1 %v6198_v46  ;;  %v2452_v60 = vadd.f32 0.7978846, %v2428_v57  ;;  %v2416_v62 = vmul.f32 %v6897_v59, %v6897_v59  ;;  %v2536_v44 = vmul.f32 0.5, %v6897_v59  ;;  %v1926_v57 = vadd.f32 %v6889_v45, %v390_v41  ;;  %v6273_v41 = vld [vmem:[#allocation8 + $0x184] ss:$12 sps:$4 sm:$0xff]  }
 0x14e   :  { %v6933_v45 = vadd.f32 %v6881_v32, %v1922_v56  ;;  %v6282_v56 = vld [vmem:[#allocation8 + $0x154] ss:$12 sps:$4 sm:$0xff]  }
 0x14f   :  { %v2476_v2 = vmul.f32 %v2452_v60, %v6893_v49  ;;  %2367 = vmatpush1.bf16.msra.mxu0 %v6199_v55  ;;  %v2440_v4 = vmul.f32 0.035677407, %v2416_v62  ;;  %v6249_v62 = vld [vmem:[#allocation8 + $0x1e4] ss:$12 sps:$4 sm:$0xff]  }
 0x150   :  { %2340 = vmatpush2.bf16.msra.mxu1 %v6196_v53  ;;  %2368 = vmatprep.subr.bf16.mxu0 %v6207_v58 }
 0x151   :  { %2341 = vmatprep.subr.bf16.mxu1 %v6204_v0  ;;  %6610 = vtanh.f32 %v2476_v2  ;;  %v2464_v7 = vadd.f32 0.7978846, %v2440_v4  ;;  %v6246_v0 = vld [vmem:[#allocation8 + $0x64] ss:$12 sps:$4 sm:$0xff]   ;;  %v6936_v2 = vadd.f32 %v6891_v48, %v1926_v57  ;;  %v6247_v4 = vld [vmem:[#allocation8 + $0x1e0] ss:$12 sps:$4 sm:$0xff]   ;;  %v2403_v48 = vmul.f32 %v6933_v45, %v6933_v45 }
 0x152   :  { %v6285_v57 = vld [vmem:[#allocation8 + $0x2d4] ss:$12 sps:$4 sm:$0xff]  }
 0x153   :  { %2369 = vmatpush1.bf16.msra.mxu0 %v6205_v63  ;;  %v2488_v9 = vmul.f32 %v2464_v7, %v6897_v59  ;;  %v398_v59 = vrot.slane %v6879_v29, %v6917_v42  ;;  %v6252_v7 = vld [vmem:[#allocation8 + $0x4c] ss:$12 sps:$4 sm:$0xff]  }
 0x154   :  { %2342 = vmatpush2.bf16.msra.mxu1 %v6202_v61  ;;  %2370 = vmatprep.subr.bf16.mxu0 %v6213_v3 }
 0x155   :  { %2343 = vmatprep.subr.bf16.mxu1 %v6210_v1  ;;  %6612 = vtanh.f32 %v2488_v9 }
 0x157   :  { %2371 = vmatpush1.bf16.msra.mxu0 %v6211_v6 }
 0x158   :  { %2344 = vmatpush2.bf16.msra.mxu1 %v6208_v5  ;;  %2372 = vmatprep.subr.bf16.mxu0 %v6219_v54 }
 0x159   :  { %2345 = vmatprep.subr.bf16.mxu1 %v6216_v8  ;;  %v6255_v8 = vld [vmem:[#allocation8 + $0x1cc] ss:$12 sps:$4 sm:$0xff]  }
 0x15b   :  { %2373 = vmatpush1.bf16.msra.mxu0 %v6217_v11  ;;  %v2415_v11 = vmul.f32 %v6936_v2, %v6936_v2 }
 0x15c   :  { %2346 = vmatpush2.bf16.msra.mxu1 %v6214_v10  ;;  %2374 = vmatprep.subr.bf16.mxu0 %v6225_v14  ;;  %v6250_v10 = vld [vmem:[#allocation8 + $0x48] ss:$12 sps:$4 sm:$0xff]  }
 0x15d   :  { %2347 = vmatprep.subr.bf16.mxu1 %v6222_v13  ;;  %v6253_v14 = vld [vmem:[#allocation8 + $0x1c8] ss:$12 sps:$4 sm:$0xff]  }
 0x15e   :  { %v6611_v25 = vpop.eup %6610 }
 0x15f   :  { %2375 = vmatpush1.bf16.msra.mxu0 %v6223_v16  ;;  %v2548_v35 = vadd.f32 1.0, %v6611_v25  ;;  %v6261_v16 = vld [vmem:[#allocation8 + $0x1b4] ss:$12 sps:$4 sm:$0xff]   ;;  %v6264_v25 = vld [vmem:[#allocation8 + $0x1c] ss:$12 sps:$4 sm:$0xff]  }
 0x160   :  { %2348 = vmatpush2.bf16.msra.mxu1 %v6220_v15  ;;  %4544 = vmatprep.subr.bf16.mxu0 %v6228_v17  ;;  %v6258_v15 = vld [vmem:[#allocation8 + $0x34] ss:$12 sps:$4 sm:$0xff]  }
 0x161   :  { %4587 = vmatprep.subr.bf16.mxu1 %v6231_v18  ;;  %v2572_v53 = vmul.f32 %v2548_v35, %v2524_v43  ;;  %v6262_v35 = vld [vmem:[#allocation8 + $0x18] ss:$12 sps:$4 sm:$0xff]  }
 0x162   :  { %v6910_v34 = vpop.f32.mrf.mxu0  ;;  %2393 = vmatmul.mubr.bf16.vlgmr.msra.gmra.mxu0 %v6849_v37  ;;  %v6613_v40 = vpop.eup %6612 }
 0x163   :  { %v2007_v33 = vpop.f32.mrf.mxu1  ;;  %2350 = vmatmul.mubr.bf16.vlgmr.msra.gmra.mxu1 %v6856_v12  ;;  %4545 = vmatpush1.bf16.msra.mxu0 %v6226_v19  ;;  %v2560_v37 = vadd.f32 1.0, %v6613_v40  ;;  %v6256_v19 = vld [vmem:[#allocation8 + $0x30] ss:$12 sps:$4 sm:$0xff]  }
 0x164   :  { %4588 = vmatpush1.bf16.msra.mxu1 %v6229_v20  ;;  %v2052_v12 = vpop.f32.mrf.mxu0  ;;  %4546 = vmatprep.subr.bf16.mxu0 %v6234_v22  ;;  %v2008_v5 = vadd.f32 %v2007_v33, %v398_v59  ;;  %v6259_v20 = vld [vmem:[#allocation8 + $0x1b0] ss:$12 sps:$4 sm:$0xff]  }
 0x165   :  { %v2009_v46 = vpop.f32.mrf.mxu1  ;;  %4589 = vmatprep.subr.bf16.mxu1 %v6237_v24  ;;  %v2584_v55 = vmul.f32 %v2560_v37, %v2536_v44  ;;  %v6270_v40 = vld [vmem:[#allocation8 + $0x4] ss:$12 sps:$4 sm:$0xff]   ;;  %v6271_v37 = vld [vmem:[#allocation8 + $0x180] ss:$12 sps:$4 sm:$0xff]  }
 0x166   :  { %v2010_v47 = vadd.f32 %v2009_v46, %v402_v27  ;;  %v2054_v49 = vpop.f32.mrf.mxu0  ;;  %v6948_v17 = vadd.f32 %v6910_v34, %v2008_v5 }
 0x167   :  { %v2011_v52 = vpop.f32.mrf.mxu1  ;;  %4547 = vmatpush1.bf16.msra.mxu0 %v6232_v30  ;;  %v6927_v61 = vpack.c.bf16 %v2584_v55, %v2572_v53  ;;  %v2427_v30 = vmul.f32 0.035677407, %v2403_v48  ;;  %v6274_v53 = vld [vmem:[#allocation8 + $0x168] ss:$12 sps:$4 sm:$0xff]  }
 0x168   :  { %v6923_v58 = vadd.f32 %v2052_v12, %v2010_v47  ;;  %4590 = vmatpush1.bf16.msra.mxu1 %v6235_v31  ;;  %4548 = vmatprep.subr.bf16.mxu0 %v6240_v38  ;;  %v2056_v3 = vpop.f32.mrf.mxu0  ;;  %v2012_v9 = vadd.f32 %v2011_v52, %v398_v59  ;;  %v2439_v31 = vmul.f32 0.035677407, %v2415_v11  ;;  %v2405_v33 = vmul.f32 %v6948_v17, %v6948_v17  ;;  %v6265_v38 = vld [vmem:[#allocation8 + $0x198] ss:$12 sps:$4 sm:$0xff]   ;;  %v6268_v12 = vld [vmem:[#allocation8] ss:$12 sps:$4 sm:$0xff]  }
 0x169   :  { %v2013_v60 = vpop.f32.mrf.mxu1  ;;  %4591 = vmatprep.subr.bf16.mxu1 %v6243_v39  ;;  %4576 = vmatprep.mubr.bf16.mxu0 %v6927_v61  ;;  %v2451_v43 = vadd.f32 0.7978846, %v2427_v30  ;;  %v6277_v55 = vld [vmem:[#allocation8 + $0x2e8] ss:$12 sps:$4 sm:$0xff]   ;;  %v6280_v59 = vld [vmem:[#allocation8 + $0x150] ss:$12 sps:$4 sm:$0xff]  }
 0x16a   :  { %v2406_v63 = vmul.f32 %v6923_v58, %v6923_v58  ;;  %v2014_v1 = vadd.f32 %v2013_v60, %v402_v27  ;;  %v6950_v22 = vadd.f32 %v2054_v49, %v2012_v9  ;;  %v6267_v27 = vld [vmem:[#allocation8 + $0x19c] ss:$12 sps:$4 sm:$0xff]   ;;  %v2463_v44 = vadd.f32 0.7978846, %v2439_v31  ;;  %v6286_v9 = vld [vmem:[#allocation8 + $0x138] ss:$12 sps:$4 sm:$0xff]  }
 0x16b   :  { %4549 = vmatpush1.bf16.msra.mxu0 %v6238_v50  ;;  %v2429_v46 = vmul.f32 0.035677407, %v2405_v33  ;;  %v6276_v50 = vld [vmem:[#allocation8 + $0x16c] ss:$12 sps:$4 sm:$0xff]   ;;  %v6283_v60 = vld [vmem:[#allocation8 + $0x2d0] ss:$12 sps:$4 sm:$0xff]  }
 0x16c   :  { %v2430_v29 = vmul.f32 0.035677407, %v2406_v63  ;;  %4592 = vmatpush1.bf16.msra.mxu1 %v6241_v51  ;;  %v6938_v6 = vadd.f32 %v2056_v3, %v2014_v1  ;;  %4550 = vmatprep.subr.bf16.mxu0 %v6246_v0  ;;  %v2417_v39 = vmul.f32 %v6950_v22, %v6950_v22  ;;  %v6279_v51 = vld [vmem:[#allocation8 + $0x2ec] ss:$12 sps:$4 sm:$0xff]   ;;  %v2475_v63 = vmul.f32 %v2451_v43, %v6933_v45  ;;  %v6291_v1 = vld [vmem:[#allocation8 + $0x2bc] ss:$12 sps:$4 sm:$0xff]  }
 0x16d   :  { %4593 = vmatprep.subr.bf16.mxu1 %v6249_v62  ;;  %v2453_v52 = vadd.f32 0.7978846, %v2429_v46  ;;  %v2487_v3 = vmul.f32 %v2463_v44, %v6936_v2  ;;  %v6307_v30 = vld [vmem:[#allocation8 + $0x270] ss:$12 sps:$4 sm:$0xff]  }
 0x16e   :  { %v2454_v54 = vadd.f32 0.7978846, %v2430_v29  ;;  %v2418_v32 = vmul.f32 %v6938_v6, %v6938_v6  ;;  %v2441_v47 = vmul.f32 0.035677407, %v2417_v39  ;;  %v6310_v39 = vld [vmem:[#allocation8 + $0xd8] ss:$12 sps:$4 sm:$0xff]  }
 0x16f   :  { %4551 = vmatpush1.bf16.msra.mxu0 %v6244_v36  ;;  %v6288_v36 = vld [vmem:[#allocation8 + $0x13c] ss:$12 sps:$4 sm:$0xff]   ;;  %v6318_v43 = vld [vmem:[#allocation8 + $0xc4] ss:$12 sps:$4 sm:$0xff]  }
 0x170   :  { %v2478_v13 = vmul.f32 %v2454_v54, %v6923_v58  ;;  %4594 = vmatpush1.bf16.msra.mxu1 %v6247_v4  ;;  %v2442_v18 = vmul.f32 0.035677407, %v2418_v32  ;;  %4552 = vmatprep.subr.bf16.mxu0 %v6252_v7  ;;  %v2465_v49 = vadd.f32 0.7978846, %v2441_v47  ;;  %v2526_v4 = vmul.f32 0.5, %v6923_v58 }
 0x171   :  { %4595 = vmatprep.subr.bf16.mxu1 %v6255_v8  ;;  %v2538_v7 = vmul.f32 0.5, %v6938_v6  ;;  %v2477_v54 = vmul.f32 %v2453_v52, %v6948_v17  ;;  %v6289_v32 = vld [vmem:[#allocation8 + $0x2b8] ss:$12 sps:$4 sm:$0xff]   ;;  %v2535_v47 = vmul.f32 0.5, %v6936_v2  ;;  %v6316_v52 = vld [vmem:[#allocation8 + $0xc0] ss:$12 sps:$4 sm:$0xff]  }
 0x172   :  { %6614 = vtanh.f32 %v2478_v13  ;;  %v2466_v24 = vadd.f32 0.7978846, %v2442_v18  ;;  %v2489_v5 = vmul.f32 %v2465_v49, %v6950_v22  ;;  %v6294_v58 = vld [vmem:[#allocation8 + $0x124] ss:$12 sps:$4 sm:$0xff]   ;;  %v6292_v13 = vld [vmem:[#allocation8 + $0x120] ss:$12 sps:$4 sm:$0xff]  }
 0x173   :  { %4553 = vmatpush1.bf16.msra.mxu0 %v6250_v10  ;;  %v6298_v18 = vld [vmem:[#allocation8 + $0x108] ss:$12 sps:$4 sm:$0xff]  }
 0x174   :  { %4596 = vmatpush1.bf16.msra.mxu1 %v6253_v14  ;;  %v2490_v34 = vmul.f32 %v2466_v24, %v6938_v6  ;;  %4554 = vmatprep.subr.bf16.mxu0 %v6258_v15  ;;  %v6297_v6 = vld [vmem:[#allocation8 + $0x2a4] ss:$12 sps:$4 sm:$0xff]   ;;  %v6295_v14 = vld [vmem:[#allocation8 + $0x2a0] ss:$12 sps:$4 sm:$0xff]  }
 0x175   :  { %4597 = vmatprep.subr.bf16.mxu1 %v6261_v16  ;;  %v6300_v15 = vld [vmem:[#allocation8 + $0x10c] ss:$12 sps:$4 sm:$0xff]   ;;  %v6306_v24 = vld [vmem:[#allocation8 + $0xf4] ss:$12 sps:$4 sm:$0xff]  }
 0x176   :  { %6616 = vtanh.f32 %v2490_v34  ;;  %v6303_v16 = vld [vmem:[#allocation8 + $0x28c] ss:$12 sps:$4 sm:$0xff]   ;;  %v6312_v34 = vld [vmem:[#allocation8 + $0xdc] ss:$12 sps:$4 sm:$0xff]  }
 0x177   :  { %4555 = vmatpush1.bf16.msra.mxu0 %v6256_v19  ;;  %6618 = vtanh.f32 %v2475_v63  ;;  %v6301_v19 = vld [vmem:[#allocation8 + $0x288] ss:$12 sps:$4 sm:$0xff]  }
 0x178   :  { %4598 = vmatpush1.bf16.msra.mxu1 %v6259_v20  ;;  %4556 = vmatprep.subr.bf16.mxu0 %v6264_v25  ;;  %6620 = vtanh.f32 %v2487_v3  ;;  %v409_v20 = vsub.s32 5, %v6874_v23  ;;  %v6309_v25 = vld [vmem:[#allocation8 + $0x274] ss:$12 sps:$4 sm:$0xff]  }
 0x179   :  { %4599 = vmatprep.subr.bf16.mxu1 %v6267_v27  ;;  %6622 = vtanh.f32 %v2489_v5  ;;  %v6304_v27 = vld [vmem:[#allocation8 + $0xf0] ss:$12 sps:$4 sm:$0xff]  }
 0x17a   :  { %6624 = vtanh.f32 %v2477_v54  ;;  %v6337_v5 = vld [vmem:[#allocation8 + $0x510] ss:$12 sps:$4 sm:$0xff]  }
 0x17b   :  { %4557 = vmatpush1.bf16.msra.mxu0 %v6262_v35  ;;  %v6315_v35 = vld [vmem:[#allocation8 + $0x25c] ss:$12 sps:$4 sm:$0xff]  }
 0x17c   :  { %4600 = vmatpush1.bf16.msra.mxu1 %v6265_v38  ;;  %4558 = vmatprep.subr.bf16.mxu0 %v6270_v40  ;;  %v6313_v40 = vld [vmem:[#allocation8 + $0x258] ss:$12 sps:$4 sm:$0xff]  }
 0x17d   :  { %4601 = vmatprep.subr.bf16.mxu1 %v6273_v41 }
 0x17f   :  { %v6615_v0 = vpop.eup %6614  ;;  %4559 = vmatpush1.bf16.msra.mxu0 %v6268_v12  ;;  %v6321_v12 = vld [vmem:[#allocation8 + $0x244] ss:$12 sps:$4 sm:$0xff]  }
 0x180   :  { %4602 = vmatpush1.bf16.msra.mxu1 %v6271_v37  ;;  %4560 = vmatprep.subr.bf16.mxu0 %v6276_v50  ;;  %v2550_v62 = vadd.f32 1.0, %v6615_v0  ;;  %v2523_v0 = vmul.f32 0.5, %v6933_v45  ;;  %v6327_v45 = vld [vmem:[#allocation8 + $0x394] ss:$12 sps:$4 sm:$0xff]  }
 0x181   :  { %4603 = vmatprep.subr.bf16.mxu1 %v6279_v51  ;;  %v2537_v51 = vmul.f32 0.5, %v6950_v22 }
 0x182   :  { %v2574_v10 = vmul.f32 %v2550_v62, %v2526_v4  ;;  %v6331_v62 = vld [vmem:[#allocation8 + $0x528] ss:$12 sps:$4 sm:$0xff]   ;;  %v6325_v4 = vld [vmem:[#allocation8 + $0x390] ss:$12 sps:$4 sm:$0xff]  }
 0x183   :  { %v6617_v29 = vpop.eup %6616  ;;  %4561 = vmatpush2.bf16.msra.mxu0 %v6274_v53  ;;  %v6319_v53 = vld [vmem:[#allocation8 + $0x240] ss:$12 sps:$4 sm:$0xff]  }
 0x184   :  { %4604 = vmatpush2.bf16.msra.mxu1 %v6277_v55  ;;  %4562 = vmatprep.subr.bf16.mxu0 %v6282_v56  ;;  %v2562_v8 = vadd.f32 1.0, %v6617_v29  ;;  %v6619_v31 = vpop.eup %6618  ;;  %v6324_v55 = vld [vmem:[#allocation8 + $0x3ac] ss:$12 sps:$4 sm:$0xff]  }
 0x185   :  { %4605 = vmatprep.subr.bf16.mxu1 %v6285_v57  ;;  %v6621_v33 = vpop.eup %6620  ;;  %v2547_v37 = vadd.f32 1.0, %v6619_v31  ;;  %v2525_v57 = vmul.f32 0.5, %v6948_v17  ;;  %v6339_v17 = vld [vmem:[#allocation8 + $0x514] ss:$12 sps:$4 sm:$0xff]  }
 0x186   :  { %v2586_v48 = vmul.f32 %v2562_v8, %v2538_v7  ;;  %v6623_v38 = vpop.eup %6622  ;;  %v2559_v44 = vadd.f32 1.0, %v6621_v33  ;;  %v6977_v29 = vld [vmem:[#allocation7] sm:$0xff]  ;;  %v6349_v33 = vld [vmem:[#allocation8 + $0x4e0] ss:$12 sps:$4 sm:$0xff]  }
 0x187   :  { %4563 = vmatpush2.bf16.msra.mxu0 %v6280_v59  ;;  %v6625_v41 = vpop.eup %6624  ;;  %v2561_v46 = vadd.f32 1.0, %v6623_v38  ;;  %v6333_v59 = vld [vmem:[#allocation8 + $0x52c] ss:$12 sps:$4 sm:$0xff]   ;;  %v2571_v2 = vmul.f32 %v2547_v37, %v2523_v0  ;;  %v410_v3 = vrot.slane %v6977_v29, %v409_v20  ;;  %v6363_v37 = vld [vmem:[#allocation8 + $0x4b4] ss:$12 sps:$4 sm:$0xff]  }
 0x188   :  { %4606 = vmatpush2.bf16.msra.mxu1 %v6283_v60  ;;  %v6963_v11 = vpack.c.bf16 %v2586_v48, %v2574_v10  ;;  %4564 = vmatprep.subr.bf16.mxu0 %v6288_v36  ;;  %v2549_v50 = vadd.f32 1.0, %v6625_v41  ;;  %v2583_v56 = vmul.f32 %v2559_v44, %v2535_v47  ;;  %v6322_v60 = vld [vmem:[#allocation8 + $0x3a8] ss:$12 sps:$4 sm:$0xff]   ;;  %v6971_v36 = vpop.f32.mrf.mxu1  ;;  %v405_v10 = vsub.s32 4, %v6874_v23  ;;  %v6361_v0 = vld [vmem:[#allocation8 + $0x4b0] ss:$12 sps:$4 sm:$0xff]  }
 0x189   :  { %4607 = vmatprep.subr.bf16.mxu1 %v6291_v1  ;;  %v2585_v49 = vmul.f32 %v2561_v46, %v2537_v51  ;;  %v6348_v44 = vld [vmem:[#allocation8 + $0x334] ss:$12 sps:$4 sm:$0xff]   ;;  %v6346_v51 = vld [vmem:[#allocation8 + $0x330] ss:$12 sps:$4 sm:$0xff]  }
 0x18a   :  { %4619 = vmatprep.mubr.bf16.mxu1 %v6963_v11  ;;  %v2573_v63 = vmul.f32 %v2549_v50, %v2525_v57  ;;  %v6973_v22 = vpack.c.bf16 %v2583_v56, %v2571_v2  ;;  %v2138_v8 = vpop.f32.mrf.mxu1  ;;  %v6369_v56 = vld [vmem:[#allocation8 + $0x49c] ss:$12 sps:$4 sm:$0xff]   ;;  %v6367_v2 = vld [vmem:[#allocation8 + $0x498] ss:$12 sps:$4 sm:$0xff]  }
 0x18b   :  { %4565 = vmatpush2.bf16.msra.mxu0 %v6286_v9  ;;  %v6330_v9 = vld [vmem:[#allocation8 + $0x37c] ss:$12 sps:$4 sm:$0xff]  }
 0x18c   :  { %4608 = vmatpush2.bf16.msra.mxu1 %v6289_v32  ;;  %4566 = vmatprep.subr.bf16.mxu0 %v6294_v58  ;;  %v6975_v1 = vpack.c.bf16 %v2585_v49, %v2573_v63  ;;  %v6345_v32 = vld [vmem:[#allocation8 + $0x4fc] ss:$12 sps:$4 sm:$0xff]   ;;  %v6328_v58 = vld [vmem:[#allocation8 + $0x378] ss:$12 sps:$4 sm:$0xff]  }
 0x18d   :  { %4609 = vmatprep.subr.bf16.mxu1 %v6297_v6  ;;  %v6375_v63 = vld [vmem:[#allocation8 + $0x484] ss:$12 sps:$4 sm:$0xff]  }
 0x18f   :  { %4567 = vmatpush2.bf16.msra.mxu0 %v6292_v13  ;;  %v2140_v13 = vpop.f32.mrf.mxu1 }
 0x190   :  { %4610 = vmatpush2.bf16.msra.mxu1 %v6295_v14  ;;  %4568 = vmatprep.subr.bf16.mxu0 %v6300_v15  ;;  %v6343_v15 = vld [vmem:[#allocation8 + $0x4f8] ss:$12 sps:$4 sm:$0xff]  }
 0x191   :  { %4611 = vmatprep.subr.bf16.mxu1 %v6303_v16 }
 0x193   :  { %4569 = vmatpush2.bf16.msra.mxu0 %v6298_v18  ;;  %v6336_v18 = vld [vmem:[#allocation8 + $0x364] ss:$12 sps:$4 sm:$0xff]  }
 0x194   :  { %4612 = vmatpush2.bf16.msra.mxu1 %v6301_v19  ;;  %4570 = vmatprep.subr.bf16.mxu0 %v6306_v24  ;;  %v6351_v19 = vld [vmem:[#allocation8 + $0x4e4] ss:$12 sps:$4 sm:$0xff]   ;;  %v6334_v24 = vld [vmem:[#allocation8 + $0x360] ss:$12 sps:$4 sm:$0xff]  }
 0x195   :  { %4613 = vmatprep.subr.bf16.mxu1 %v6309_v25 }
 0x197   :  { %4571 = vmatpush2.bf16.msra.mxu0 %v6304_v27  ;;  %v6342_v27 = vld [vmem:[#allocation8 + $0x34c] ss:$12 sps:$4 sm:$0xff]  }
 0x198   :  { %4614 = vmatpush2.bf16.msra.mxu1 %v6307_v30  ;;  %4572 = vmatprep.subr.bf16.mxu0 %v6312_v34  ;;  %v2142_v30 = vpop.f32.mrf.mxu1  ;;  %v6357_v34 = vld [vmem:[#allocation8 + $0x4cc] ss:$12 sps:$4 sm:$0xff]  }
 0x199   :  { %4615 = vmatprep.subr.bf16.mxu1 %v6315_v35  ;;  %v406_v35 = vrot.slane %v6977_v29, %v405_v10  ;;  %v6379_v10 = vld [vmem:[#allocation8 + $0x5e8] ss:$12 sps:$4 sm:$0xff]  }
 0x19b   :  { %4573 = vmatpush2.bf16.msra.mxu0 %v6310_v39 }
 0x19c   :  { %4616 = vmatpush2.bf16.msra.mxu1 %v6313_v40  ;;  %4574 = vmatprep.subr.bf16.mxu0 %v6318_v43  ;;  %v6340_v43 = vld [vmem:[#allocation8 + $0x348] ss:$12 sps:$4 sm:$0xff]  }
 0x19d   :  { %4617 = vmatprep.subr.bf16.mxu1 %v6321_v12  ;;  %v6355_v12 = vld [vmem:[#allocation8 + $0x4c8] ss:$12 sps:$4 sm:$0xff]  }
 0x19f   :  { %4575 = vmatpush2.bf16.msra.mxu0 %v6316_v52 }
 0x1a0   :  { %4618 = vmatpush2.bf16.msra.mxu1 %v6319_v53  ;;  %4630 = vmatprep.subr.bf16.mxu0 %v6324_v55  ;;  %v6354_v55 = vld [vmem:[#allocation8 + $0x31c] ss:$12 sps:$4 sm:$0xff]  }
 0x1a1   :  { %4673 = vmatprep.subr.bf16.mxu1 %v6333_v59  ;;  %v6352_v59 = vld [vmem:[#allocation8 + $0x318] ss:$12 sps:$4 sm:$0xff]  }
 0x1a2   :  { %v2093_v7 = vpop.f32.mrf.mxu0  ;;  %4577 = vmatmul.mubr.bf16.vlgmr.msra.gmra.mxu0 %v6973_v22 }
 0x1a3   :  { %4620 = vmatmul.mubr.bf16.vlgmr.msra.gmra.mxu1 %v6975_v1  ;;  %4631 = vmatpush1.bf16.msra.mxu0 %v6322_v60  ;;  %v2094_v50 = vadd.f32 %v2093_v7, %v406_v35  ;;  %v6381_v7 = vld [vmem:[#allocation8 + $0x5ec] ss:$12 sps:$4 sm:$0xff]  }
 0x1a4   :  { %4674 = vmatpush1.bf16.msra.mxu1 %v6331_v62  ;;  %v2095_v54 = vpop.f32.mrf.mxu0  ;;  %4632 = vmatprep.subr.bf16.mxu0 %v6327_v45  ;;  %v6360_v62 = vld [vmem:[#allocation8 + $0x304] ss:$12 sps:$4 sm:$0xff]  }
 0x1a5   :  { %4675 = vmatprep.subr.bf16.mxu1 %v6339_v17  ;;  %v2096_v48 = vadd.f32 %v2095_v54, %v410_v3  ;;  %v6997_v49 = vadd.f32 %v6971_v36, %v2094_v50  ;;  %v6358_v17 = vld [vmem:[#allocation8 + $0x300] ss:$12 sps:$4 sm:$0xff]   ;;  %v6364_v54 = vld [vmem:[#allocation8 + $0x468] ss:$12 sps:$4 sm:$0xff]  }
 0x1a6   :  { %v2097_v6 = vpop.f32.mrf.mxu0  ;;  %v6373_v36 = vld [vmem:[#allocation8 + $0x480] ss:$12 sps:$4 sm:$0xff]  }
 0x1a7   :  { %v6983_v14 = vadd.f32 %v2138_v8, %v2096_v48  ;;  %4633 = vmatpush1.bf16.msra.mxu0 %v6325_v4  ;;  %v2098_v40 = vadd.f32 %v2097_v6, %v406_v35  ;;  %v2407_v45 = vmul.f32 %v6997_v49, %v6997_v49  ;;  %v6387_v48 = vld [vmem:[#allocation8 + $0x5d4] ss:$12 sps:$4 sm:$0xff]  }
 0x1a8   :  { %4676 = vmatpush1.bf16.msra.mxu1 %v6337_v5  ;;  %v2099_v16 = vpop.f32.mrf.mxu0  ;;  %4634 = vmatprep.subr.bf16.mxu0 %v6330_v9  ;;  %v6366_v5 = vld [vmem:[#allocation8 + $0x46c] ss:$12 sps:$4 sm:$0xff]   ;;  %v417_v9 = vsub.s32 7, %v6874_v23 }
 0x1a9   :  { %4677 = vmatprep.subr.bf16.mxu1 %v6345_v32  ;;  %v2408_v20 = vmul.f32 %v6983_v14, %v6983_v14  ;;  %v2100_v25 = vadd.f32 %v2099_v16, %v410_v3  ;;  %v6993_v52 = vadd.f32 %v2140_v13, %v2098_v40  ;;  %v413_v3 = vsub.s32 6, %v6874_v23  ;;  %v6372_v32 = vld [vmem:[#allocation8 + $0x454] ss:$12 sps:$4 sm:$0xff]  }
 0x1aa   :  { %v2431_v8 = vmul.f32 0.035677407, %v2407_v45  ;;  %v418_v16 = vrot.slane %v6977_v29, %v417_v9  ;;  %v6382_v45 = vld [vmem:[#allocation8 + $0x420] ss:$12 sps:$4 sm:$0xff]  }
 0x1ab   :  { %v2432_v31 = vmul.f32 0.035677407, %v2408_v20  ;;  %4635 = vmatpush1.bf16.msra.mxu0 %v6328_v58  ;;  %v6988_v38 = vadd.f32 %v2142_v30, %v2100_v25  ;;  %v2419_v60 = vmul.f32 %v6993_v52, %v6993_v52  ;;  %v414_v13 = vrot.slane %v6977_v29, %v413_v3  ;;  %v6378_v25 = vld [vmem:[#allocation8 + $0x43c] ss:$12 sps:$4 sm:$0xff]   ;;  %v6397_v3 = vld [vmem:[#allocation8 + $0x5a0] ss:$12 sps:$4 sm:$0xff]  }
 0x1ac   :  { %4678 = vmatpush1.bf16.msra.mxu1 %v6343_v15  ;;  %4636 = vmatprep.subr.bf16.mxu0 %v6336_v18  ;;  %v2455_v15 = vadd.f32 0.7978846, %v2431_v8  ;;  %v6370_v18 = vld [vmem:[#allocation8 + $0x450] ss:$12 sps:$4 sm:$0xff]   ;;  %v6405_v8 = vld [vmem:[#allocation8 + $0x58c] ss:$12 sps:$4 sm:$0xff]  }
 0x1ad   :  { %4679 = vmatprep.subr.bf16.mxu1 %v6351_v19  ;;  %v2456_v39 = vadd.f32 0.7978846, %v2432_v31  ;;  %v2420_v41 = vmul.f32 %v6988_v38, %v6988_v38  ;;  %v2443_v4 = vmul.f32 0.035677407, %v2419_v60  ;;  %v2540_v35 = vmul.f32 0.5, %v6988_v38 }
 0x1ae   :  { %v6525_v23 = vld [vmem:[#allocation8 + $0x840] ss:$12 sps:$4 sm:$0xff]  }
 0x1af   :  { %v2480_v46 = vmul.f32 %v2456_v39, %v6983_v14  ;;  %4637 = vmatpush1.bf16.msra.mxu0 %v6334_v24  ;;  %v2444_v47 = vmul.f32 0.035677407, %v2420_v41  ;;  %v2467_v6 = vadd.f32 0.7978846, %v2443_v4  ;;  %v6393_v41 = vld [vmem:[#allocation8 + $0x5bc] ss:$12 sps:$4 sm:$0xff]  }
 0x1b0   :  { %4680 = vmatpush1.bf16.msra.mxu1 %v6349_v33  ;;  %4638 = vmatprep.subr.bf16.mxu0 %v6342_v27  ;;  %v6385_v27 = vld [vmem:[#allocation8 + $0x5d0] ss:$12 sps:$4 sm:$0xff]   ;;  %v2528_v33 = vmul.f32 0.5, %v6983_v14 }
 0x1b1   :  { %4681 = vmatprep.subr.bf16.mxu1 %v6357_v34  ;;  %6626 = vtanh.f32 %v2480_v46  ;;  %v2468_v53 = vadd.f32 0.7978846, %v2444_v47  ;;  %v2491_v34 = vmul.f32 %v2467_v6, %v6993_v52  ;;  %v6396_v6 = vld [vmem:[#allocation8 + $0x3f4] ss:$12 sps:$4 sm:$0xff]  }
 0x1b3   :  { %4639 = vmatpush1.bf16.msra.mxu0 %v6340_v43  ;;  %v2492_v57 = vmul.f32 %v2468_v53, %v6988_v38  ;;  %v2479_v43 = vmul.f32 %v2455_v15, %v6997_v49 }
 0x1b4   :  { %4682 = vmatpush1.bf16.msra.mxu1 %v6355_v12  ;;  %4640 = vmatprep.subr.bf16.mxu0 %v6348_v44  ;;  %v6376_v12 = vld [vmem:[#allocation8 + $0x438] ss:$12 sps:$4 sm:$0xff]  }
 0x1b5   :  { %4683 = vmatprep.subr.bf16.mxu1 %v6363_v37  ;;  %6628 = vtanh.f32 %v2492_v57  ;;  %v6391_v37 = vld [vmem:[#allocation8 + $0x5b8] ss:$12 sps:$4 sm:$0xff]  }
 0x1b6   :  { %6630 = vtanh.f32 %v2491_v34 }
 0x1b7   :  { %4641 = vmatpush1.bf16.msra.mxu0 %v6346_v51  ;;  %v6384_v51 = vld [vmem:[#allocation8 + $0x424] ss:$12 sps:$4 sm:$0xff]   ;;  %6632 = vtanh.f32 %v2479_v43 }
 0x1b8   :  { %4684 = vmatpush1.bf16.msra.mxu1 %v6361_v0  ;;  %4642 = vmatprep.subr.bf16.mxu0 %v6354_v55 }
 0x1b9   :  { %4685 = vmatprep.subr.bf16.mxu1 %v6369_v56  ;;  %v6399_v56 = vld [vmem:[#allocation8 + $0x5a4] ss:$12 sps:$4 sm:$0xff]  }
 0x1bb   :  { %4643 = vmatpush1.bf16.msra.mxu0 %v6352_v59 }
 0x1bc   :  { %4686 = vmatpush1.bf16.msra.mxu1 %v6367_v2  ;;  %4644 = vmatprep.subr.bf16.mxu0 %v6360_v62 }
 0x1bd   :  { %4687 = vmatprep.subr.bf16.mxu1 %v6375_v63 }
 0x1be   :  { %v6627_v58 = vpop.eup %6626 }
 0x1bf   :  { %4645 = vmatpush1.bf16.msra.mxu0 %v6358_v17  ;;  %v2552_v24 = vadd.f32 1.0, %v6627_v58  ;;  %v6390_v17 = vld [vmem:[#allocation8 + $0x40c] ss:$12 sps:$4 sm:$0xff]   ;;  %v6388_v58 = vld [vmem:[#allocation8 + $0x408] ss:$12 sps:$4 sm:$0xff]  }
 0x1c0   :  { %4688 = vmatpush1.bf16.msra.mxu1 %v6373_v36  ;;  %4646 = vmatprep.subr.bf16.mxu0 %v6366_v5 }
 0x1c1   :  { %4689 = vmatprep.subr.bf16.mxu1 %v6381_v7  ;;  %v2576_v50 = vmul.f32 %v2552_v24, %v2528_v33  ;;  %v6394_v24 = vld [vmem:[#allocation8 + $0x3f0] ss:$12 sps:$4 sm:$0xff]  }
 0x1c2   :  { %v2222_v20 = vpop.f32.mrf.mxu0  ;;  %v6629_v30 = vpop.eup %6628  ;;  %v6414_v33 = vld [vmem:[#allocation8 + $0x55c] ss:$12 sps:$4 sm:$0xff]  }
 0x1c3   :  { %v2179_v19 = vpop.f32.mrf.mxu1  ;;  %4647 = vmatpush2.bf16.msra.mxu0 %v6364_v54  ;;  %v2564_v29 = vadd.f32 1.0, %v6629_v30  ;;  %v6409_v30 = vld [vmem:[#allocation8 + $0x570] ss:$12 sps:$4 sm:$0xff]   ;;  %v6631_v34 = vpop.eup %6630 }
 0x1c4   :  { %v2180_v31 = vadd.f32 %v2179_v19, %v414_v13  ;;  %4690 = vmatpush2.bf16.msra.mxu1 %v6379_v10  ;;  %v2224_v40 = vpop.f32.mrf.mxu0  ;;  %4648 = vmatprep.subr.bf16.mxu0 %v6372_v32  ;;  %v6411_v19 = vld [vmem:[#allocation8 + $0x574] ss:$12 sps:$4 sm:$0xff]   ;;  %v2563_v43 = vadd.f32 1.0, %v6631_v34  ;;  %v6471_v34 = vld [vmem:[#allocation8 + $0x7cc] ss:$12 sps:$4 sm:$0xff]  }
 0x1c5   :  { %v2181_v39 = vpop.f32.mrf.mxu1  ;;  %4691 = vmatprep.subr.bf16.mxu1 %v6387_v48  ;;  %v2588_v14 = vmul.f32 %v2564_v29, %v2540_v35  ;;  %v6400_v35 = vld [vmem:[#allocation8 + $0x3d8] ss:$12 sps:$4 sm:$0xff]  }
 0x1c6   :  { %v7011_v44 = vadd.f32 %v2222_v20, %v2180_v31  ;;  %v2182_v46 = vadd.f32 %v2181_v39, %v418_v16  ;;  %v2226_v0 = vpop.f32.mrf.mxu0  ;;  %v6412_v39 = vld [vmem:[#allocation8 + $0x558] ss:$12 sps:$4 sm:$0xff]  }
 0x1c7   :  { %v2183_v47 = vpop.f32.mrf.mxu1  ;;  %4649 = vmatpush2.bf16.msra.mxu0 %v6370_v18  ;;  %v7017_v59 = vpack.c.bf16 %v2588_v14, %v2576_v50  ;;  %v6408_v29 = vld [vmem:[#allocation8 + $0x3c4] ss:$12 sps:$4 sm:$0xff]   ;;  %v6420_v50 = vld [vmem:[#allocation8 + $0x6ac] ss:$12 sps:$4 sm:$0xff]   ;;  %v2527_v14 = vmul.f32 0.5, %v6997_v49 }
 0x1c8   :  { %v2409_v38 = vmul.f32 %v7011_v44, %v7011_v44  ;;  %v7015_v53 = vadd.f32 %v2224_v40, %v2182_v46  ;;  %v2184_v55 = vadd.f32 %v2183_v47, %v414_v13  ;;  %4692 = vmatpush2.bf16.msra.mxu1 %v6385_v27  ;;  %4650 = vmatprep.subr.bf16.mxu0 %v6378_v25  ;;  %v2228_v7 = vpop.f32.mrf.mxu0  ;;  %v6402_v27 = vld [vmem:[#allocation8 + $0x3dc] ss:$12 sps:$4 sm:$0xff]   ;;  %v6633_v40 = vpop.eup %6632  ;;  %v6415_v47 = vld [vmem:[#allocation8 + $0x540] ss:$12 sps:$4 sm:$0xff]  }
 0x1c9   :  { %v2185_v57 = vpop.f32.mrf.mxu1  ;;  %4693 = vmatprep.subr.bf16.mxu1 %v6393_v41  ;;  %4662 = vmatprep.mubr.bf16.mxu0 %v7017_v59  ;;  %v6417_v41 = vld [vmem:[#allocation8 + $0x544] ss:$12 sps:$4 sm:$0xff]   ;;  %v2551_v46 = vadd.f32 1.0, %v6633_v40  ;;  %v6469_v40 = vld [vmem:[#allocation8 + $0x7c8] ss:$12 sps:$4 sm:$0xff]  }
 0x1ca   :  { %v2433_v60 = vmul.f32 0.035677407, %v2409_v38  ;;  %v2410_v62 = vmul.f32 %v7015_v53, %v7015_v53  ;;  %v7021_v2 = vadd.f32 %v2226_v0, %v2184_v55  ;;  %v2186_v63 = vadd.f32 %v2185_v57, %v418_v16  ;;  %v6403_v16 = vld [vmem:[#allocation8 + $0x588] ss:$12 sps:$4 sm:$0xff]   ;;  %v6447_v38 = vld [vmem:[#allocation8 + $0x82c] ss:$12 sps:$4 sm:$0xff]  }
 0x1cb   :  { %4651 = vmatpush2.bf16.msra.mxu0 %v6376_v12  ;;  %v2539_v12 = vmul.f32 0.5, %v6993_v52  ;;  %v2575_v0 = vmul.f32 %v2551_v46, %v2527_v14  ;;  %v6418_v57 = vld [vmem:[#allocation8 + $0x6a8] ss:$12 sps:$4 sm:$0xff]   ;;  %v6444_v46 = vld [vmem:[#allocation8 + $0x76c] ss:$12 sps:$4 sm:$0xff]  }
 0x1cc   :  { %v2457_v36 = vadd.f32 0.7978846, %v2433_v60  ;;  %v2434_v4 = vmul.f32 0.035677407, %v2410_v62  ;;  %v2421_v5 = vmul.f32 %v7021_v2, %v7021_v2  ;;  %4694 = vmatpush2.bf16.msra.mxu1 %v6391_v37  ;;  %v7026_v54 = vadd.f32 %v2228_v7, %v2186_v63  ;;  %4652 = vmatprep.subr.bf16.mxu0 %v6384_v51  ;;  %v6406_v37 = vld [vmem:[#allocation8 + $0x3c0] ss:$12 sps:$4 sm:$0xff]  }
 0x1cd   :  { %4695 = vmatprep.subr.bf16.mxu1 %v6399_v56  ;;  %v2587_v51 = vmul.f32 %v2563_v43, %v2539_v12  ;;  %v6423_v52 = vld [vmem:[#allocation8 + $0x694] ss:$12 sps:$4 sm:$0xff]   ;;  %v7049_v43 = vld [vmem:[#allocation7 + $0x8] sm:$0xf] }
 0x1ce   :  { %v2481_v9 = vmul.f32 %v2457_v36, %v7011_v44  ;;  %v2458_v32 = vadd.f32 0.7978846, %v2434_v4  ;;  %v2445_v10 = vmul.f32 0.035677407, %v2421_v5  ;;  %v2422_v48 = vmul.f32 %v7026_v54, %v7026_v54  ;;  %v6421_v36 = vld [vmem:[#allocation8 + $0x690] ss:$12 sps:$4 sm:$0xff]  }
 0x1cf   :  { %4653 = vmatpush2.bf16.msra.mxu0 %v6382_v45  ;;  %v7036_v62 = vpack.c.bf16 %v2587_v51, %v2575_v0  ;;  %v2530_v4 = vmul.f32 0.5, %v7015_v53  ;;  %v2542_v5 = vmul.f32 0.5, %v7026_v54  ;;  %v6475_v12 = vld [vmem:[#allocation8 + $0x7b0] ss:$12 sps:$4 sm:$0xff]   ;;  %v6442_v14 = vld [vmem:[#allocation8 + $0x768] ss:$12 sps:$4 sm:$0xff]  }
 0x1d0   :  { %v2482_v13 = vmul.f32 %v2458_v32, %v7015_v53  ;;  %v2469_v15 = vadd.f32 0.7978846, %v2445_v10  ;;  %4696 = vmatpush2.bf16.msra.mxu1 %v6397_v3  ;;  %v2446_v18 = vmul.f32 0.035677407, %v2422_v48  ;;  %4654 = vmatprep.subr.bf16.mxu0 %v6390_v17  ;;  %6634 = vtanh.f32 %v2481_v9  ;;  %v6453_v53 = vld [vmem:[#allocation8 + $0x814] ss:$12 sps:$4 sm:$0xff]  }
 0x1d1   :  { %4697 = vmatprep.subr.bf16.mxu1 %v6405_v8  ;;  %v2541_v3 = vmul.f32 0.5, %v7021_v2  ;;  %v6426_v8 = vld [vmem:[#allocation8 + $0x67c] ss:$12 sps:$4 sm:$0xff]   ;;  %v2529_v9 = vmul.f32 0.5, %v7011_v44  ;;  %v6427_v44 = vld [vmem:[#allocation8 + $0x660] ss:$12 sps:$4 sm:$0xff]  }
 0x1d2   :  { %v2493_v20 = vmul.f32 %v2469_v15, %v7021_v2  ;;  %6636 = vtanh.f32 %v2482_v13  ;;  %v2470_v25 = vadd.f32 0.7978846, %v2446_v18  ;;  %v6429_v2 = vld [vmem:[#allocation8 + $0x664] ss:$12 sps:$4 sm:$0xff]   ;;  %v6445_v15 = vld [vmem:[#allocation8 + $0x828] ss:$12 sps:$4 sm:$0xff]  }
 0x1d3   :  { %4655 = vmatpush2.bf16.msra.mxu0 %v6388_v58  ;;  %v6451_v18 = vld [vmem:[#allocation8 + $0x810] ss:$12 sps:$4 sm:$0xff]   ;;  %v6450_v51 = vld [vmem:[#allocation8 + $0x754] ss:$12 sps:$4 sm:$0xff]  }
 0x1d4   :  { %6638 = vtanh.f32 %v2493_v20  ;;  %4698 = vmatpush2.bf16.msra.mxu1 %v6403_v16  ;;  %v2494_v31 = vmul.f32 %v2470_v25, %v7026_v54  ;;  %4656 = vmatprep.subr.bf16.mxu0 %v6396_v6  ;;  %v6424_v6 = vld [vmem:[#allocation8 + $0x678] ss:$12 sps:$4 sm:$0xff]   ;;  %v6430_v20 = vld [vmem:[#allocation8 + $0x648] ss:$12 sps:$4 sm:$0xff]  }
 0x1d5   :  { %4699 = vmatprep.subr.bf16.mxu1 %v6411_v19  ;;  %v6432_v54 = vld [vmem:[#allocation8 + $0x64c] ss:$12 sps:$4 sm:$0xff]   ;;  %v6459_v19 = vld [vmem:[#allocation8 + $0x7fc] ss:$12 sps:$4 sm:$0xff]   ;;  %v6489_v0 = vld [vmem:[#allocation8 + $0x784] ss:$12 sps:$4 sm:$0xff]  }
 0x1d6   :  { %6640 = vtanh.f32 %v2494_v31  ;;  %v6457_v25 = vld [vmem:[#allocation8 + $0x7f8] ss:$12 sps:$4 sm:$0xff]   ;;  %v6438_v31 = vld [vmem:[#allocation8 + $0x61c] ss:$12 sps:$4 sm:$0xff]  }
 0x1d7   :  { %4657 = vmatpush2.bf16.msra.mxu0 %v6394_v24  ;;  %v6435_v24 = vld [vmem:[#allocation8 + $0x634] ss:$12 sps:$4 sm:$0xff]  }
 0x1d8   :  { %4700 = vmatpush2.bf16.msra.mxu1 %v6409_v30  ;;  %4658 = vmatprep.subr.bf16.mxu0 %v6402_v27  ;;  %v6465_v27 = vld [vmem:[#allocation8 + $0x7e4] ss:$12 sps:$4 sm:$0xff]  }
 0x1d9   :  { %4701 = vmatprep.subr.bf16.mxu1 %v6414_v33  ;;  %v6433_v30 = vld [vmem:[#allocation8 + $0x630] ss:$12 sps:$4 sm:$0xff]   ;;  %v6463_v33 = vld [vmem:[#allocation8 + $0x7e0] ss:$12 sps:$4 sm:$0xff]  }
 0x1db   :  { %4659 = vmatpush2.bf16.msra.mxu0 %v6400_v35  ;;  %v6436_v35 = vld [vmem:[#allocation8 + $0x618] ss:$12 sps:$4 sm:$0xff]  }
 0x1dc   :  { %4702 = vmatpush2.bf16.msra.mxu1 %v6412_v39  ;;  %4660 = vmatprep.subr.bf16.mxu0 %v6408_v29  ;;  %v6441_v39 = vld [vmem:[#allocation8 + $0x604] ss:$12 sps:$4 sm:$0xff]   ;;  %v6477_v29 = vld [vmem:[#allocation8 + $0x7b4] ss:$12 sps:$4 sm:$0xff]  }
 0x1dd   :  { %4703 = vmatprep.subr.bf16.mxu1 %v6417_v41  ;;  %v6635_v55 = vpop.eup %6634  ;;  %v6439_v41 = vld [vmem:[#allocation8 + $0x600] ss:$12 sps:$4 sm:$0xff]  }
 0x1de   :  { %v2553_v17 = vadd.f32 1.0, %v6635_v55  ;;  %v426_v55 = vrot.slane %v7049_v43, %v6877_v28 }
 0x1df   :  { %v6637_v56 = vpop.eup %6636  ;;  %4661 = vmatpush2.bf16.msra.mxu0 %v6406_v37  ;;  %v6483_v37 = vld [vmem:[#allocation8 + $0x79c] ss:$12 sps:$4 sm:$0xff]  }
 0x1e0   :  { %4704 = vmatpush2.bf16.msra.mxu1 %v6415_v47  ;;  %4716 = vmatprep.subr.bf16.mxu0 %v6420_v50  ;;  %v2554_v49 = vadd.f32 1.0, %v6637_v56  ;;  %v2577_v58 = vmul.f32 %v2553_v17, %v2529_v9  ;;  %v422_v50 = vrot.slane %v7049_v43, %v6905_v26 }
 0x1e1   :  { %v6639_v60 = vpop.eup %6638  ;;  %4759 = vmatprep.subr.bf16.mxu1 %v6447_v38  ;;  %v6481_v38 = vld [vmem:[#allocation8 + $0x798] ss:$12 sps:$4 sm:$0xff]  }
 0x1e2   :  { %v2565_v63 = vadd.f32 1.0, %v6639_v60  ;;  %4663 = vmatmul.mubr.bf16.vlgmr.msra.gmra.mxu0 %v7036_v62  ;;  %v2578_v10 = vmul.f32 %v2554_v49, %v2530_v4  ;;  %v6456_v49 = vld [vmem:[#allocation8 + $0x73c] ss:$12 sps:$4 sm:$0xff]  }
 0x1e3   :  { %v6641_v45 = vpop.eup %6640  ;;  %4717 = vmatpush1.bf16.msra.mxu0 %v6418_v57  ;;  %v2308_v47 = vpop.f32.mrf.mxu1 }
 0x1e4   :  { %v2566_v7 = vadd.f32 1.0, %v6641_v45  ;;  %4718 = vmatprep.subr.bf16.mxu0 %v6423_v52  ;;  %v2589_v32 = vmul.f32 %v2565_v63, %v2541_v3  ;;  %v6448_v52 = vld [vmem:[#allocation8 + $0x750] ss:$12 sps:$4 sm:$0xff]   ;;  %v6487_v45 = vld [vmem:[#allocation8 + $0x780] ss:$12 sps:$4 sm:$0xff]  }
 0x1e5   :  { %v2310_v57 = vpop.f32.mrf.mxu1 }
 0x1e6   :  { %v2590_v48 = vmul.f32 %v2566_v7, %v2542_v5  ;;  %v7045_v16 = vpack.c.bf16 %v2589_v32, %v2577_v58  ;;  %v6454_v32 = vld [vmem:[#allocation8 + $0x738] ss:$12 sps:$4 sm:$0xff]   ;;  %v6490_v58 = vld [vmem:[#allocation8 + $0x8e8] ss:$12 sps:$4 sm:$0xff]  }
 0x1e7   :  { %4719 = vmatpush1.bf16.msra.mxu0 %v6421_v36  ;;  %v6492_v36 = vld [vmem:[#allocation8 + $0x8ec] ss:$12 sps:$4 sm:$0xff]   ;;  %v2312_v5 = vpop.f32.mrf.mxu1 }
 0x1e8   :  { %v7043_v13 = vpack.c.bf16 %v2590_v48, %v2578_v10  ;;  %4720 = vmatprep.subr.bf16.mxu0 %v6426_v8  ;;  %v6462_v48 = vld [vmem:[#allocation8 + $0x724] ss:$12 sps:$4 sm:$0xff]  }
 0x1ea   :  { %4705 = vmatprep.mubr.bf16.mxu1 %v7043_v13 }
 0x1eb   :  { %4706 = vmatmul.mubr.bf16.vlgmr.msra.gmra.mxu1 %v7045_v16  ;;  %4721 = vmatpush1.bf16.msra.mxu0 %v6424_v6 }
 0x1ec   :  { %4722 = vmatprep.subr.bf16.mxu0 %v6429_v2  ;;  %4760 = vmatpush1.bf16.msra.mxu1 %v6445_v15 }
 0x1ed   :  { %4761 = vmatprep.subr.bf16.mxu1 %v6453_v53  ;;  %v6497_v53 = vld [vmem:[#allocation8 + $0x8d4] ss:$12 sps:$4 sm:$0xff]  }
 0x1ef   :  { %4723 = vmatpush1.bf16.msra.mxu0 %v6427_v44 }
 0x1f0   :  { %4724 = vmatprep.subr.bf16.mxu0 %v6432_v54  ;;  %4762 = vmatpush1.bf16.msra.mxu1 %v6451_v18  ;;  %v2314_v54 = vpop.f32.mrf.mxu1 }
 0x1f1   :  { %4763 = vmatprep.subr.bf16.mxu1 %v6459_v19 }
 0x1f3   :  { %4725 = vmatpush1.bf16.msra.mxu0 %v6430_v20 }
 0x1f4   :  { %4726 = vmatprep.subr.bf16.mxu0 %v6435_v24  ;;  %4764 = vmatpush1.bf16.msra.mxu1 %v6457_v25  ;;  %v6460_v24 = vld [vmem:[#allocation8 + $0x720] ss:$12 sps:$4 sm:$0xff]  }
 0x1f5   :  { %4765 = vmatprep.subr.bf16.mxu1 %v6465_v27  ;;  %v6468_v27 = vld [vmem:[#allocation8 + $0x70c] ss:$12 sps:$4 sm:$0xff]  }
 0x1f7   :  { %4727 = vmatpush1.bf16.msra.mxu0 %v6433_v30  ;;  %v6495_v30 = vld [vmem:[#allocation8 + $0x8d0] ss:$12 sps:$4 sm:$0xff]  }
 0x1f8   :  { %4728 = vmatprep.subr.bf16.mxu0 %v6438_v31  ;;  %4766 = vmatpush1.bf16.msra.mxu1 %v6463_v33 }
 0x1f9   :  { %4767 = vmatprep.subr.bf16.mxu1 %v6471_v34 }
 0x1fb   :  { %4729 = vmatpush1.bf16.msra.mxu0 %v6436_v35  ;;  %v6502_v35 = vld [vmem:[#allocation8 + $0x8bc] ss:$12 sps:$4 sm:$0xff]  }
 0x1fc   :  { %4730 = vmatprep.subr.bf16.mxu0 %v6441_v39  ;;  %4768 = vmatpush1.bf16.msra.mxu1 %v6469_v40 }
 0x1fd   :  { %4769 = vmatprep.subr.bf16.mxu1 %v6477_v29 }
 0x1ff   :  { %4731 = vmatpush1.bf16.msra.mxu0 %v6439_v41  ;;  %v6466_v41 = vld [vmem:[#allocation8 + $0x708] ss:$12 sps:$4 sm:$0xff]  }
 0x200   :  { %4732 = vmatprep.subr.bf16.mxu0 %v6444_v46  ;;  %4770 = vmatpush1.bf16.msra.mxu1 %v6475_v12  ;;  %v6474_v12 = vld [vmem:[#allocation8 + $0x6f4] ss:$12 sps:$4 sm:$0xff]  }
 0x201   :  { %4771 = vmatprep.subr.bf16.mxu1 %v6483_v37  ;;  %v6500_v37 = vld [vmem:[#allocation8 + $0x8b8] ss:$12 sps:$4 sm:$0xff]  }
 0x202   :  { %v2265_v56 = vpop.f32.mrf.mxu0 }
 0x203   :  { %v2266_v60 = vadd.f32 %v2265_v56, %v422_v50  ;;  %4733 = vmatpush2.bf16.msra.mxu0 %v6442_v14  ;;  %v6512_v56 = vld [vmem:[#allocation8 + $0x88c] ss:$12 sps:$4 sm:$0xff]  }
 0x204   :  { %v2267_v63 = vpop.f32.mrf.mxu0  ;;  %4734 = vmatprep.subr.bf16.mxu0 %v6450_v51  ;;  %4772 = vmatpush1.bf16.msra.mxu1 %v6481_v38  ;;  %v6472_v51 = vld [vmem:[#allocation8 + $0x6f0] ss:$12 sps:$4 sm:$0xff]  }
 0x205   :  { %v7055_v17 = vadd.f32 %v2308_v47, %v2266_v60  ;;  %v2268_v3 = vadd.f32 %v2267_v63, %v426_v55  ;;  %4773 = vmatprep.subr.bf16.mxu1 %v6489_v0  ;;  %v6505_v0 = vld [vmem:[#allocation8 + $0x8a0] ss:$12 sps:$4 sm:$0xff]   ;;  %v6486_v60 = vld [vmem:[#allocation8 + $0x6c4] ss:$12 sps:$4 sm:$0xff]  }
 0x206   :  { %v2269_v4 = vpop.f32.mrf.mxu0  ;;  %v6517_v63 = vld [vmem:[#allocation8 + $0x874] ss:$12 sps:$4 sm:$0xff]  }
 0x207   :  { %v2411_v7 = vmul.f32 %v7055_v17, %v7055_v17  ;;  %v7059_v8 = vadd.f32 %v2310_v57, %v2268_v3  ;;  %v2270_v9 = vadd.f32 %v2269_v4, %v422_v50  ;;  %4735 = vmatpush2.bf16.msra.mxu0 %v6448_v52  ;;  %v6507_v50 = vld [vmem:[#allocation8 + $0x8a4] ss:$12 sps:$4 sm:$0xff]   ;;  %v6510_v52 = vld [vmem:[#allocation8 + $0x888] ss:$12 sps:$4 sm:$0xff]  }
 0x208   :  { %v2271_v10 = vpop.f32.mrf.mxu0  ;;  %4736 = vmatprep.subr.bf16.mxu0 %v6456_v49  ;;  %4774 = vmatpush1.bf16.msra.mxu1 %v6487_v45  ;;  %v6478_v57 = vld [vmem:[#allocation8 + $0x6d8] ss:$12 sps:$4 sm:$0xff]   ;;  %v6484_v49 = vld [vmem:[#allocation8 + $0x6c0] ss:$12 sps:$4 sm:$0xff]   ;;  %v6493_v45 = vld [vmem:[#allocation8 + $0x170] ss:$12 sps:$4 sm:$0xff]  }
 0x209   :  { %v2435_v6 = vmul.f32 0.035677407, %v2411_v7  ;;  %v2412_v2 = vmul.f32 %v7059_v8, %v7059_v8  ;;  %v7063_v15 = vadd.f32 %v2312_v5, %v2270_v9  ;;  %4775 = vmatprep.subr.bf16.mxu1 %v6492_v36  ;;  %v2272_v44 = vadd.f32 %v2271_v10, %v426_v55  ;;  %v6480_v55 = vld [vmem:[#allocation8 + $0x6dc] ss:$12 sps:$4 sm:$0xff]  }
 0x20a   :  { %v6515_v3 = vld [vmem:[#allocation8 + $0x870] ss:$12 sps:$4 sm:$0xff]   ;;  %v430_v7 = vrot.slane %v7049_v43, %v6917_v42 }
 0x20b   :  { %v2459_v18 = vadd.f32 0.7978846, %v2435_v6  ;;  %v2436_v19 = vmul.f32 0.035677407, %v2412_v2  ;;  %v2423_v20 = vmul.f32 %v7063_v15, %v7063_v15  ;;  %4737 = vmatpush2.bf16.msra.mxu0 %v6454_v32  ;;  %v7067_v25 = vadd.f32 %v2314_v54, %v2272_v44  ;;  %v6522_v36 = vld [vmem:[#allocation8 + $0x85c] ss:$12 sps:$4 sm:$0xff]  }
 0x20c   :  { %4738 = vmatprep.subr.bf16.mxu0 %v6462_v48  ;;  %4776 = vmatpush2.bf16.msra.mxu1 %v6490_v58  ;;  %v6520_v32 = vld [vmem:[#allocation8 + $0x858] ss:$12 sps:$4 sm:$0xff]   ;;  %v434_v48 = vrot.slane %v7049_v43, %v401_v21  ;;  %v2531_v21 = vmul.f32 0.5, %v7055_v17 }
 0x20d   :  { %v2483_v31 = vmul.f32 %v2459_v18, %v7055_v17  ;;  %v2460_v33 = vadd.f32 0.7978846, %v2436_v19  ;;  %v2447_v34 = vmul.f32 0.035677407, %v2423_v20  ;;  %4777 = vmatprep.subr.bf16.mxu1 %v6497_v53  ;;  %v2424_v39 = vmul.f32 %v7067_v25, %v7067_v25  ;;  %v6527_v58 = vld [vmem:[#allocation8 + $0x844] ss:$12 sps:$4 sm:$0xff]  }
 0x20e   :  { %v2543_v18 = vmul.f32 0.5, %v7063_v15  ;;  %v2532_v20 = vmul.f32 0.5, %v7059_v8  ;;  %v6494_v17 = vld [vmem:[#allocation8 + $0xb0] ss:$12 sps:$4 sm:$0xff]  }
 0x20f   :  { %v2484_v40 = vmul.f32 %v2460_v33, %v7059_v8  ;;  %v2471_v29 = vadd.f32 0.7978846, %v2447_v34  ;;  %4739 = vmatpush2.bf16.msra.mxu0 %v6460_v24  ;;  %v2448_v46 = vmul.f32 0.035677407, %v2424_v39  ;;  %6642 = vtanh.f32 %v2483_v31 }
 0x210   :  { %4740 = vmatprep.subr.bf16.mxu0 %v6468_v27  ;;  %4778 = vmatpush2.bf16.msra.mxu1 %v6495_v30  ;;  %v2544_v24 = vmul.f32 0.5, %v7067_v25 }
 0x211   :  { %v2495_v47 = vmul.f32 %v2471_v29, %v7063_v15  ;;  %4779 = vmatprep.subr.bf16.mxu1 %v6502_v35  ;;  %6644 = vtanh.f32 %v2484_v40  ;;  %v2472_v14 = vadd.f32 0.7978846, %v2448_v46  ;;  %v6530_v35 = vld [vmem:[#allocation8 + $0x2f0] ss:$12 sps:$4 sm:$0xff]  }
 0x213   :  { %6646 = vtanh.f32 %v2495_v47  ;;  %4741 = vmatpush2.bf16.msra.mxu0 %v6466_v41  ;;  %v2496_v38 = vmul.f32 %v2472_v14, %v7067_v25 }
 0x214   :  { %4742 = vmatprep.subr.bf16.mxu0 %v6474_v12  ;;  %4780 = vmatpush2.bf16.msra.mxu1 %v6500_v37 }
 0x215   :  { %4781 = vmatprep.subr.bf16.mxu1 %v6507_v50  ;;  %6648 = vtanh.f32 %v2496_v38  ;;  %v6498_v38 = vld [vmem:[#allocation8 + $0x158] ss:$12 sps:$4 sm:$0xff]  }
 0x217   :  { %4743 = vmatpush2.bf16.msra.mxu0 %v6472_v51 }
 0x218   :  { %4744 = vmatprep.subr.bf16.mxu0 %v6480_v55  ;;  %4782 = vmatpush2.bf16.msra.mxu1 %v6505_v0 }
 0x219   :  { %4783 = vmatprep.subr.bf16.mxu1 %v6512_v56 }
 0x21b   :  { %4745 = vmatpush2.bf16.msra.mxu0 %v6478_v57 }
 0x21c   :  { %4746 = vmatprep.subr.bf16.mxu0 %v6486_v60  ;;  %4784 = vmatpush2.bf16.msra.mxu1 %v6510_v52  ;;  %v6643_v4 = vpop.eup %6642 }
 0x21d   :  { %4785 = vmatprep.subr.bf16.mxu1 %v6517_v63  ;;  %v2555_v54 = vadd.f32 1.0, %v6643_v4  ;;  %v6499_v63 = vld [vmem:[#allocation8 + $0x98] ss:$12 sps:$4 sm:$0xff]  }
 0x21e   :  { %v6645_v5 = vpop.eup %6644 }
 0x21f   :  { %4747 = vmatpush2.bf16.msra.mxu0 %v6484_v49  ;;  %v2556_v53 = vadd.f32 1.0, %v6645_v5  ;;  %v2579_v29 = vmul.f32 %v2555_v54, %v2531_v21  ;;  %v6519_v54 = vld [vmem:[#allocation8 + $0x38] ss:$12 sps:$4 sm:$0xff]  }
 0x220   :  { %v6647_v9 = vpop.eup %6646  ;;  %5649 = vmatprep.subr.bf16.mxu0 %v6493_v45  ;;  %4786 = vmatpush2.bf16.msra.mxu1 %v6515_v3 }
 0x221   :  { %v2567_v10 = vadd.f32 1.0, %v6647_v9  ;;  %4787 = vmatprep.subr.bf16.mxu1 %v6522_v36  ;;  %v2580_v15 = vmul.f32 %v2556_v53, %v2532_v20  ;;  %v6503_v36 = vld [vmem:[#allocation8 + $0x140] ss:$12 sps:$4 sm:$0xff]   ;;  %v6514_v53 = vld [vmem:[#allocation8 + $0x50] ss:$12 sps:$4 sm:$0xff]  }
 0x222   :  { %v2394_v2 = vpop.f32.mrf.mxu0  ;;  %v6649_v44 = vpop.eup %6648 }
 0x223   :  { %v2351_v6 = vpop.f32.mrf.mxu1  ;;  %v2568_v31 = vadd.f32 1.0, %v6649_v44  ;;  %v2591_v43 = vmul.f32 %v2567_v10, %v2543_v18  ;;  %v6518_v44 = vld [vmem:[#allocation8 + $0xf8] ss:$12 sps:$4 sm:$0xff]   ;;  %v6523_v18 = vld [vmem:[#allocation8 + $0xe0] ss:$12 sps:$4 sm:$0xff]  }
 0x224   :  { %v2352_v19 = vadd.f32 %v2351_v6, %v430_v7  ;;  %v2396_v30 = vpop.f32.mrf.mxu0  ;;  %4788 = vmatpush2.bf16.msra.mxu1 %v6520_v32  ;;  %v6504_v32 = vld [vmem:[#allocation8 + $0x80] ss:$12 sps:$4 sm:$0xff]   ;;  %v6509_v6 = vld [vmem:[#allocation8 + $0x68] ss:$12 sps:$4 sm:$0xff]  }
 0x225   :  { %v2353_v27 = vpop.f32.mrf.mxu1  ;;  %4789 = vmatprep.subr.bf16.mxu1 %v6527_v58  ;;  %v2592_v40 = vmul.f32 %v2568_v31, %v2544_v24  ;;  %v7094_v51 = vpack.c.bf16 %v2591_v43, %v2579_v29  ;;  %v6528_v31 = vld [vmem:[#allocation8 + $0xc8] ss:$12 sps:$4 sm:$0xff]  }
 0x226   :  { %v7084_v33 = vadd.f32 %v2394_v2, %v2352_v19  ;;  %v2354_v34 = vadd.f32 %v2353_v27, %v434_v48  ;;  %v2398_v46 = vpop.f32.mrf.mxu0  ;;  %v6513_v2 = vld [vmem:[#allocation8 + $0x110] ss:$12 sps:$4 sm:$0xff]   ;;  %v6524_v27 = vld [vmem:[#allocation8 + $0x20] ss:$12 sps:$4 sm:$0xff]  }
 0x227   :  { %v2355_v39 = vpop.f32.mrf.mxu1  ;;  %v7090_v37 = vpack.c.bf16 %v2592_v40, %v2580_v15  ;;  %v6529_v15 = vld [vmem:[#allocation8 + $0x8] ss:$12 sps:$4 sm:$0xff]  }
 0x228   :  { %v2413_v8 = vmul.f32 %v7084_v33, %v7084_v33  ;;  %v7088_v25 = vadd.f32 %v2396_v30, %v2354_v34  ;;  %v2356_v41 = vadd.f32 %v2355_v39, %v430_v7  ;;  %4790 = vmatpush2.bf16.msra.mxu1 %v6525_v23  ;;  %v2400_v60 = vpop.f32.mrf.mxu0  ;;  %v2533_v29 = vmul.f32 0.5, %v7084_v33 }
 0x229   :  { %v2357_v12 = vpop.f32.mrf.mxu1  ;;  %5671 = vmatprep.subr.bf16.mxu1 %v6530_v35  ;;  %4748 = vmatprep.mubr.bf16.mxu0 %v7090_v37 }
 0x22a   :  { %v2437_v47 = vmul.f32 0.035677407, %v2413_v8  ;;  %v2414_v50 = vmul.f32 %v7088_v25, %v7088_v25  ;;  %v2399_v14 = vadd.f32 %v2398_v46, %v2356_v41  ;;  %v2358_v55 = vadd.f32 %v2357_v12, %v434_v48  ;;  %4749 = vmatmul.mubr.bf16.vlgmr.msra.gmra.mxu0 %v7094_v51  ;;  %v6508_v48 = vld [vmem:[#allocation8 + $0x128] ss:$12 sps:$4 sm:$0xff]   ;;  %v6531_v41 = vld [vmem:[#allocation8 + $0x470] ss:$12 sps:$4 sm:$0xff]  }
 0x22b   :  { %5650 = vmatpush3.bf16.msra.mxu0 %v6494_v17  ;;  %4834 = vmatprep.mubr.bf16.mxu0 %v6927_v61  ;;  %v2534_v35 = vmul.f32 0.5, %v7088_v25 }
 0x22c   :  { %v2461_v0 = vadd.f32 0.7978846, %v2437_v47  ;;  %v2438_v56 = vmul.f32 0.035677407, %v2414_v50  ;;  %v2425_v57 = vmul.f32 %v2399_v14, %v2399_v14  ;;  %v2401_v52 = vadd.f32 %v2400_v60, %v2358_v55  ;;  %5651 = vmatprep.subr.bf16.mxu0 %v6498_v38  ;;  %v6532_v50 = vld [vmem:[#allocation8 + $0x230] ss:$12 sps:$4 sm:$0xff]  }
 0x22d   :  { %v2545_v34 = vmul.f32 0.5, %v2399_v14  ;;  %v6533_v38 = vld [vmem:[#allocation8 + $0x3b0] ss:$12 sps:$4 sm:$0xff]   ;;  %v6535_v55 = vld [vmem:[#allocation8 + $0x458] ss:$12 sps:$4 sm:$0xff]  }
 0x22e   :  { %v2485_v49 = vmul.f32 %v2461_v0, %v7084_v33  ;;  %v2462_v45 = vadd.f32 0.7978846, %v2438_v56  ;;  %v2449_v3 = vmul.f32 0.035677407, %v2425_v57  ;;  %v2426_v4 = vmul.f32 %v2401_v52, %v2401_v52  ;;  %v6536_v33 = vld [vmem:[#allocation8 + $0x218] ss:$12 sps:$4 sm:$0xff]  }
 0x22f   :  { %5652 = vmatpush3.bf16.msra.mxu0 %v6499_v63  ;;  %v2546_v39 = vmul.f32 0.5, %v2401_v52  ;;  %v6537_v0 = vld [vmem:[#allocation8 + $0x398] ss:$12 sps:$4 sm:$0xff]   ;;  %v6538_v56 = vld [vmem:[#allocation8 + $0x2c0] ss:$12 sps:$4 sm:$0xff]  }
 0x230   :  { %v2486_v5 = vmul.f32 %v2462_v45, %v7088_v25  ;;  %v2473_v7 = vadd.f32 0.7978846, %v2449_v3  ;;  %v2450_v9 = vmul.f32 0.035677407, %v2426_v4  ;;  %6650 = vtanh.f32 %v2485_v49  ;;  %5653 = vmatprep.subr.bf16.mxu0 %v6503_v36  ;;  %v6534_v25 = vld [vmem:[#allocation8 + $0x2d8] ss:$12 sps:$4 sm:$0xff]  }
 0x231   :  { %v6539_v57 = vld [vmem:[#allocation8 + $0x440] ss:$12 sps:$4 sm:$0xff]   ;;  %v6543_v63 = vld [vmem:[#allocation8 + $0x428] ss:$12 sps:$4 sm:$0xff]   ;;  %v6548_v3 = vld [vmem:[#allocation8 + $0x1d0] ss:$12 sps:$4 sm:$0xff]  }
 0x232   :  { %v2497_v10 = vmul.f32 %v2473_v7, %v2399_v14  ;;  %6652 = vtanh.f32 %v2486_v5  ;;  %v2474_v61 = vadd.f32 0.7978846, %v2450_v9  ;;  %v6540_v60 = vld [vmem:[#allocation8 + $0x200] ss:$12 sps:$4 sm:$0xff]   ;;  %v6544_v49 = vld [vmem:[#allocation8 + $0x1e8] ss:$12 sps:$4 sm:$0xff]  }
 0x233   :  { %5654 = vmatpush3.bf16.msra.mxu0 %v6504_v32  ;;  %v6545_v45 = vld [vmem:[#allocation8 + $0x368] ss:$12 sps:$4 sm:$0xff]   ;;  %v6549_v36 = vld [vmem:[#allocation8 + $0x350] ss:$12 sps:$4 sm:$0xff]   ;;  %v6550_v4 = vld [vmem:[#allocation8 + $0x278] ss:$12 sps:$4 sm:$0xff]  }
 0x234   :  { %6654 = vtanh.f32 %v2497_v10  ;;  %v2498_v58 = vmul.f32 %v2474_v61, %v2401_v52  ;;  %5655 = vmatprep.subr.bf16.mxu0 %v6508_v48  ;;  %v6541_v52 = vld [vmem:[#allocation8 + $0x380] ss:$12 sps:$4 sm:$0xff]   ;;  %v6551_v5 = vld [vmem:[#allocation8 + $0x3f8] ss:$12 sps:$4 sm:$0xff]  }
 0x235   :  { %v6552_v7 = vld [vmem:[#allocation8 + $0x1b8] ss:$12 sps:$4 sm:$0xff]   ;;  %v6554_v32 = vld [vmem:[#allocation8 + $0x260] ss:$12 sps:$4 sm:$0xff]  }
 0x236   :  { %6656 = vtanh.f32 %v2498_v58  ;;  %v6553_v9 = vld [vmem:[#allocation8 + $0x338] ss:$12 sps:$4 sm:$0xff]   ;;  %v6555_v10 = vld [vmem:[#allocation8 + $0x3e0] ss:$12 sps:$4 sm:$0xff]   ;;  %v6558_v58 = vld [vmem:[#allocation8 + $0x248] ss:$12 sps:$4 sm:$0xff]  }
 0x237   :  { %5656 = vmatpush3.bf16.msra.mxu0 %v6509_v6  ;;  %v6556_v48 = vld [vmem:[#allocation8 + $0x1a0] ss:$12 sps:$4 sm:$0xff]   ;;  %v6559_v6 = vld [vmem:[#allocation8 + $0x3c8] ss:$12 sps:$4 sm:$0xff]  }
 0x238   :  { %5657 = vmatprep.subr.bf16.mxu0 %v6513_v2  ;;  %v6557_v61 = vld [vmem:[#allocation8 + $0x320] ss:$12 sps:$4 sm:$0xff]   ;;  %v6560_v2 = vld [vmem:[#allocation8 + $0x188] ss:$12 sps:$4 sm:$0xff]  }
 0x23b   :  { %5658 = vmatpush3.bf16.msra.mxu0 %v6514_v53  ;;  %v6561_v53 = vld [vmem:[#allocation8 + $0x308] ss:$12 sps:$4 sm:$0xff]  }
 0x23c   :  { %5659 = vmatprep.subr.bf16.mxu0 %v6518_v44  ;;  %v6562_v44 = vld [vmem:[#allocation8 + $0x5f0] ss:$12 sps:$4 sm:$0xff]  }
 0x23d   :  { %v6651_v19 = vpop.eup %6650 }
 0x23e   :  { %v2557_v43 = vadd.f32 1.0, %v6651_v19  ;;  %v6565_v19 = vld [vmem:[#allocation8 + $0x6b0] ss:$12 sps:$4 sm:$0xff]  }
 0x23f   :  { %v6653_v20 = vpop.eup %6652  ;;  %5660 = vmatpush3.bf16.msra.mxu0 %v6519_v54  ;;  %v6563_v54 = vld [vmem:[#allocation8 + $0x770] ss:$12 sps:$4 sm:$0xff]  }
 0x240   :  { %5661 = vmatprep.subr.bf16.mxu0 %v6523_v18  ;;  %v2558_v23 = vadd.f32 1.0, %v6653_v20  ;;  %v2581_v17 = vmul.f32 %v2557_v43, %v2533_v29  ;;  %v6564_v18 = vld [vmem:[#allocation8 + $0x530] ss:$12 sps:$4 sm:$0xff]   ;;  %v6566_v20 = vld [vmem:[#allocation8 + $0x5d8] ss:$12 sps:$4 sm:$0xff]  }
 0x241   :  { %v6655_v24 = vpop.eup %6654  ;;  %v6573_v43 = vld [vmem:[#allocation8 + $0x680] ss:$12 sps:$4 sm:$0xff]   ;;  %v6583_v29 = vld [vmem:[#allocation8 + $0x6f8] ss:$12 sps:$4 sm:$0xff]  }
 0x242   :  { %v2569_v30 = vadd.f32 1.0, %v6655_v24  ;;  %v2582_v46 = vmul.f32 %v2558_v23, %v2534_v35  ;;  %v6567_v24 = vld [vmem:[#allocation8 + $0x758] ss:$12 sps:$4 sm:$0xff]   ;;  %v6571_v23 = vld [vmem:[#allocation8 + $0x740] ss:$12 sps:$4 sm:$0xff]  }
 0x243   :  { %v6657_v21 = vpop.eup %6656  ;;  %5662 = vmatpush3.bf16.msra.mxu0 %v6524_v27  ;;  %v6568_v27 = vld [vmem:[#allocation8 + $0x518] ss:$12 sps:$4 sm:$0xff]   ;;  %v6578_v35 = vld [vmem:[#allocation8 + $0x590] ss:$12 sps:$4 sm:$0xff]  }
 0x244   :  { %v2570_v40 = vadd.f32 1.0, %v6657_v21  ;;  %v2593_v8 = vmul.f32 %v2569_v30, %v2545_v34  ;;  %5663 = vmatprep.subr.bf16.mxu0 %v6528_v31  ;;  %v6569_v30 = vld [vmem:[#allocation8 + $0x698] ss:$12 sps:$4 sm:$0xff]   ;;  %v6570_v31 = vld [vmem:[#allocation8 + $0x5c0] ss:$12 sps:$4 sm:$0xff]  }
 0x245   :  { %v6572_v21 = vld [vmem:[#allocation8 + $0x500] ss:$12 sps:$4 sm:$0xff]   ;;  %v6576_v34 = vld [vmem:[#allocation8 + $0x4e8] ss:$12 sps:$4 sm:$0xff]  }
 0x246   :  { %v2594_v12 = vmul.f32 %v2570_v40, %v2546_v39  ;;  %v7105_v14 = vpack.c.bf16 %v2593_v8, %v2581_v17  ;;  %v6580_v39 = vld [vmem:[#allocation8 + $0x4d0] ss:$12 sps:$4 sm:$0xff]   ;;  %v6582_v40 = vld [vmem:[#allocation8 + $0x578] ss:$12 sps:$4 sm:$0xff]   ;;  %v6588_v17 = vld [vmem:[#allocation8 + $0x4a0] ss:$12 sps:$4 sm:$0xff]  }
 0x247   :  { %5664 = vmatpush3.bf16.msra.mxu0 %v6529_v15  ;;  %v6581_v15 = vld [vmem:[#allocation8 + $0x650] ss:$12 sps:$4 sm:$0xff]   ;;  %v6584_v8 = vld [vmem:[#allocation8 + $0x4b8] ss:$12 sps:$4 sm:$0xff]  }
 0x248   :  { %v7103_v47 = vpack.c.bf16 %v2594_v12, %v2582_v46  ;;  %5693 = vmatprep.subr.bf16.mxu0 %v6531_v41  ;;  %v6585_v41 = vld [vmem:[#allocation8 + $0x638] ss:$12 sps:$4 sm:$0xff]   ;;  %v6586_v46 = vld [vmem:[#allocation8 + $0x560] ss:$12 sps:$4 sm:$0xff]  }
 0x249   :  { %v6587_v12 = vld [vmem:[#allocation8 + $0x6e0] ss:$12 sps:$4 sm:$0xff]  }
 0x24a   :  { %4791 = vmatprep.mubr.bf16.mxu1 %v7103_v47  ;;  %4835 = vmatmul.mubr.bf16.vlgmr.msra.gmra.mxu0 %v6973_v22  ;;  %v6542_v22 = vld [vmem:[#allocation8 + $0x2a8] ss:$12 sps:$4 sm:$0xff]  }
 0x24b   :  { %4792 = vmatmul.mubr.bf16.vlgmr.msra.gmra.mxu1 %v7105_v14  ;;  %5694 = vmatpush3.bf16.msra.mxu0 %v6533_v38  ;;  %v6590_v38 = vld [vmem:[#allocation8 + $0x548] ss:$12 sps:$4 sm:$0xff]  }
 0x24c   :  { %5672 = vmatpush3.bf16.msra.mxu1 %v6532_v50  ;;  %4916 = vmatprep.mubr.bf16.mxu0 %v7017_v59  ;;  %v6546_v59 = vld [vmem:[#allocation8 + $0x290] ss:$12 sps:$4 sm:$0xff]   ;;  %v6589_v50 = vld [vmem:[#allocation8 + $0x620] ss:$12 sps:$4 sm:$0xff]  }
 0x24d   :  { %4875 = vmatprep.mubr.bf16.mxu1 %v6963_v11  ;;  %5673 = vmatprep.subr.bf16.mxu1 %v6534_v25  ;;  %v6547_v11 = vld [vmem:[#allocation8 + $0x410] ss:$12 sps:$4 sm:$0xff]   ;;  %v6591_v25 = vld [vmem:[#allocation8 + $0x6c8] ss:$12 sps:$4 sm:$0xff]  }
 0x24e   :  { %5695 = vmatprep.subr.bf16.mxu0 %v6535_v55  ;;  %v6592_v55 = vld [vmem:[#allocation8 + $0x488] ss:$12 sps:$4 sm:$0xff]  }
 0x24f   :  { %5696 = vmatpush3.bf16.msra.mxu0 %v6537_v0  ;;  %v6594_v0 = vld [vmem:[#allocation8 + $0x8f0] ss:$12 sps:$4 sm:$0xff]  }
 0x250   :  { %5674 = vmatpush3.bf16.msra.mxu1 %v6536_v33  ;;  %5697 = vmatprep.subr.bf16.mxu0 %v6539_v57  ;;  %v6593_v33 = vld [vmem:[#allocation8 + $0x608] ss:$12 sps:$4 sm:$0xff]   ;;  %v6596_v57 = vld [vmem:[#allocation8 + $0x8d8] ss:$12 sps:$4 sm:$0xff]  }
 0x251   :  { %5675 = vmatprep.subr.bf16.mxu1 %v6538_v56  ;;  %v6595_v56 = vld [vmem:[#allocation8 + $0x830] ss:$12 sps:$4 sm:$0xff]  }
 0x253   :  { %5698 = vmatpush3.bf16.msra.mxu0 %v6541_v52  ;;  %v6598_v52 = vld [vmem:[#allocation8 + $0x8c0] ss:$12 sps:$4 sm:$0xff]  }
 0x254   :  { %5676 = vmatpush3.bf16.msra.mxu1 %v6540_v60  ;;  %5699 = vmatprep.subr.bf16.mxu0 %v6543_v63  ;;  %v6597_v60 = vld [vmem:[#allocation8 + $0x818] ss:$12 sps:$4 sm:$0xff]   ;;  %v6600_v63 = vld [vmem:[#allocation8 + $0x8a8] ss:$12 sps:$4 sm:$0xff]  }
 0x255   :  { %5677 = vmatprep.subr.bf16.mxu1 %v6542_v22  ;;  %v6599_v22 = vld [vmem:[#allocation8 + $0x800] ss:$12 sps:$4 sm:$0xff]  }
 0x257   :  { %5700 = vmatpush3.bf16.msra.mxu0 %v6545_v45  ;;  %v6602_v45 = vld [vmem:[#allocation8 + $0x890] ss:$12 sps:$4 sm:$0xff]  }
 0x258   :  { %5678 = vmatpush3.bf16.msra.mxu1 %v6544_v49  ;;  %5701 = vmatprep.subr.bf16.mxu0 %v6547_v11  ;;  %v6601_v49 = vld [vmem:[#allocation8 + $0x7e8] ss:$12 sps:$4 sm:$0xff]   ;;  %v6606_v11 = vld [vmem:[#allocation8 + $0x860] ss:$12 sps:$4 sm:$0xff]  }
 0x259   :  { %5679 = vmatprep.subr.bf16.mxu1 %v6546_v59  ;;  %v6603_v59 = vld [vmem:[#allocation8 + $0x7d0] ss:$12 sps:$4 sm:$0xff]  }
 0x25b   :  { %5702 = vmatpush3.bf16.msra.mxu0 %v6549_v36  ;;  %v6609_v36 = vld [vmem:[#allocation8 + $0x788] ss:$12 sps:$4 sm:$0xff]  }
 0x25c   :  { %5680 = vmatpush3.bf16.msra.mxu1 %v6548_v3  ;;  %5703 = vmatprep.subr.bf16.mxu0 %v6551_v5  ;;  %v6608_v3 = vld [vmem:[#allocation8 + $0x848] ss:$12 sps:$4 sm:$0xff]  }
 0x25d   :  { %5681 = vmatprep.subr.bf16.mxu1 %v6550_v4 }
 0x25f   :  { %5704 = vmatpush3.bf16.msra.mxu0 %v6553_v9 }
 0x260   :  { %5682 = vmatpush3.bf16.msra.mxu1 %v6552_v7  ;;  %5705 = vmatprep.subr.bf16.mxu0 %v6555_v10 }
 0x261   :  { %5683 = vmatprep.subr.bf16.mxu1 %v6554_v32 }
 0x262   :  { %v4578_v4 = vpop.f32.mrf.mxu0 }
 0x263   :  { %5706 = vmatpush3.bf16.msra.mxu0 %v6557_v61  ;;  %v4621_v9 = vpop.f32.mrf.mxu1 }
 0x264   :  { %5684 = vmatpush3.bf16.msra.mxu1 %v6556_v48  ;;  %5707 = vmatprep.subr.bf16.mxu0 %v6559_v6  ;;  %v4580_v5 = vpop.f32.mrf.mxu0  ;;  %v2991_v6 = vld [vmem:[#allocation10] sm:$0x7] }
 0x265   :  { %5685 = vmatprep.subr.bf16.mxu1 %v6558_v58  ;;  %v4623_v10 = vpop.f32.mrf.mxu1 }
 0x266   :  { %v4582_v7 = vpop.f32.mrf.mxu0 }
 0x267   :  { %5708 = vmatpush3.bf16.msra.mxu0 %v6561_v53  ;;  %v4625_v61 = vpop.f32.mrf.mxu1 }
 0x268   :  { %5686 = vmatpush3.bf16.msra.mxu1 %v6560_v2  ;;  %5737 = vmatprep.subr.bf16.mxu0 %v6563_v54  ;;  %v4584_v32 = vpop.f32.mrf.mxu0 }
 0x269   :  { %5715 = vmatprep.subr.bf16.mxu1 %v6562_v44  ;;  %v4627_v2 = vpop.f32.mrf.mxu1  ;;  %v2996_v44 = vrot.slane %v2991_v6, %v6905_v26 }
 0x26a   :  { %4917 = vmatmul.mubr.bf16.vlgmr.msra.gmra.mxu0 %v7036_v62  ;;  %v6575_v62 = vld [vmem:[#allocation8 + $0x728] ss:$12 sps:$4 sm:$0xff]  }
 0x26b   :  { %4876 = vmatmul.mubr.bf16.vlgmr.msra.gmra.mxu1 %v6975_v1  ;;  %5738 = vmatpush3.bf16.msra.mxu0 %v6565_v19  ;;  %v6574_v1 = vld [vmem:[#allocation8 + $0x5a8] ss:$12 sps:$4 sm:$0xff]  }
 0x26c   :  { %5716 = vmatpush3.bf16.msra.mxu1 %v6564_v18  ;;  %4957 = vmatprep.mubr.bf16.mxu1 %v7043_v13  ;;  %v6577_v13 = vld [vmem:[#allocation8 + $0x668] ss:$12 sps:$4 sm:$0xff]   ;;  %v3000_v18 = vrot.slane %v2991_v6, %v6877_v28 }
 0x26d   :  { %4998 = vmatprep.mubr.bf16.mxu0 %v7090_v37  ;;  %5717 = vmatprep.subr.bf16.mxu1 %v6566_v20  ;;  %v6579_v37 = vld [vmem:[#allocation8 + $0x710] ss:$12 sps:$4 sm:$0xff]   ;;  %v4579_v20 = vadd.f32 %v4578_v4, %v2996_v44  ;;  %v3004_v4 = vrot.slane %v2991_v6, %v6917_v42 }
 0x26e   :  { %5739 = vmatprep.subr.bf16.mxu0 %v6567_v24 }
 0x26f   :  { %5740 = vmatpush3.bf16.msra.mxu0 %v6569_v30  ;;  %v4622_v30 = vadd.f32 %v4621_v9, %v4579_v20 }
 0x270   :  { %5718 = vmatpush3.bf16.msra.mxu1 %v6568_v27  ;;  %5741 = vmatprep.subr.bf16.mxu0 %v6571_v23  ;;  %v4581_v27 = vadd.f32 %v4580_v5, %v3000_v18 }
 0x271   :  { %5719 = vmatprep.subr.bf16.mxu1 %v6570_v31  ;;  %v4583_v31 = vadd.f32 %v4582_v7, %v2996_v44 }
 0x273   :  { %5742 = vmatpush3.bf16.msra.mxu0 %v6573_v43  ;;  %v4624_v43 = vadd.f32 %v4623_v10, %v4581_v27 }
 0x274   :  { %5720 = vmatpush3.bf16.msra.mxu1 %v6572_v21  ;;  %5743 = vmatprep.subr.bf16.mxu0 %v6575_v62 }
 0x275   :  { %5721 = vmatprep.subr.bf16.mxu1 %v6574_v1  ;;  %v4585_v1 = vadd.f32 %v4584_v32, %v3000_v18 }
 0x277   :  { %5744 = vmatpush3.bf16.msra.mxu0 %v6577_v13 }
 0x278   :  { %5722 = vmatpush3.bf16.msra.mxu1 %v6576_v34  ;;  %5745 = vmatprep.subr.bf16.mxu0 %v6579_v37  ;;  %v4626_v34 = vadd.f32 %v4625_v61, %v4583_v31 }
 0x279   :  { %5723 = vmatprep.subr.bf16.mxu1 %v6578_v35 }
 0x27b   :  { %5746 = vmatpush3.bf16.msra.mxu0 %v6581_v15 }
 0x27c   :  { %5724 = vmatpush3.bf16.msra.mxu1 %v6580_v39  ;;  %5747 = vmatprep.subr.bf16.mxu0 %v6583_v29  ;;  %v4628_v39 = vadd.f32 %v4627_v2, %v4585_v1 }
 0x27d   :  { %5725 = vmatprep.subr.bf16.mxu1 %v6582_v40 }
 0x27f   :  { %5748 = vmatpush3.bf16.msra.mxu0 %v6585_v41 }
 0x280   :  { %5726 = vmatpush3.bf16.msra.mxu1 %v6584_v8  ;;  %5749 = vmatprep.subr.bf16.mxu0 %v6587_v12 }
 0x281   :  { %5727 = vmatprep.subr.bf16.mxu1 %v6586_v46 }
 0x283   :  { %5750 = vmatpush3.bf16.msra.mxu0 %v6589_v50 }
 0x284   :  { %5728 = vmatpush3.bf16.msra.mxu1 %v6588_v17  ;;  %5751 = vmatprep.subr.bf16.mxu0 %v6591_v25 }
 0x285   :  { %5729 = vmatprep.subr.bf16.mxu1 %v6590_v38 }
 0x287   :  { %5752 = vmatpush3.bf16.msra.mxu0 %v6593_v33 }
 0x288   :  { %5730 = vmatpush3.bf16.msra.mxu1 %v6592_v55 }
 0x289   :  { %5759 = vmatprep.subr.bf16.mxu1 %v6594_v0 }
 0x28a   :  { %4999 = vmatmul.mubr.bf16.vlgmr.msra.gmra.mxu0 %v7094_v51  ;;  %v6605_v51 = vld [vmem:[#allocation8 + $0x7b8] ss:$12 sps:$4 sm:$0xff]  }
 0x28b   :  { %4958 = vmatmul.mubr.bf16.vlgmr.msra.gmra.mxu1 %v7045_v16  ;;  %v6604_v16 = vld [vmem:[#allocation8 + $0x878] ss:$12 sps:$4 sm:$0xff]  }
 0x28c   :  { %5760 = vmatpush3.bf16.msra.mxu1 %v6595_v56  ;;  %5039 = vmatprep.mubr.bf16.mxu1 %v7103_v47  ;;  %v6607_v47 = vld [vmem:[#allocation8 + $0x7a0] ss:$12 sps:$4 sm:$0xff]  }
 0x28d   :  { %5761 = vmatprep.subr.bf16.mxu1 %v6596_v57 }
 0x290   :  { %5762 = vmatpush3.bf16.msra.mxu1 %v6597_v60 }
 0x291   :  { %5763 = vmatprep.subr.bf16.mxu1 %v6598_v52 }
 0x294   :  { %5764 = vmatpush3.bf16.msra.mxu1 %v6599_v22 }
 0x295   :  { %5765 = vmatprep.subr.bf16.mxu1 %v6600_v63 }
 0x298   :  { %5766 = vmatpush3.bf16.msra.mxu1 %v6601_v49 }
 0x299   :  { %5767 = vmatprep.subr.bf16.mxu1 %v6602_v45 }
 0x29c   :  { %5768 = vmatpush3.bf16.msra.mxu1 %v6603_v59 }
 0x29d   :  { %5769 = vmatprep.subr.bf16.mxu1 %v6604_v16 }
 0x2a0   :  { %5770 = vmatpush3.bf16.msra.mxu1 %v6605_v51 }
 0x2a1   :  { %5771 = vmatprep.subr.bf16.mxu1 %v6606_v11 }
 0x2a2   :  { %v4664_v48 = vpop.f32.mrf.mxu0 }
 0x2a3   :  { %v4665_v62 = vadd.f32 %v4664_v48, %v4622_v30 }
 0x2a4   :  { %5772 = vmatpush3.bf16.msra.mxu1 %v6607_v47  ;;  %v4666_v58 = vpop.f32.mrf.mxu0 }
 0x2a5   :  { %5773 = vmatprep.subr.bf16.mxu1 %v6608_v3  ;;  %v4667_v13 = vadd.f32 %v4666_v58, %v4624_v43 }
 0x2a6   :  { %v4668_v53 = vpop.f32.mrf.mxu0 }
 0x2a7   :  { %v4669_v15 = vadd.f32 %v4668_v53, %v4626_v34 }
 0x2a8   :  { %5774 = vmatpush3.bf16.msra.mxu1 %v6609_v36  ;;  %v4670_v19 = vpop.f32.mrf.mxu0 }
 0x2a9   :  { %v4671_v8 = vadd.f32 %v4670_v19, %v4628_v39 }
 0x2ab   :  { %5040 = vmatmul.mubr.bf16.vlgmr.msra.gmra.mxu1 %v7105_v14  ;;  %v4707_v54 = vpop.f32.mrf.mxu1 }
 0x2ac   :  { %v4708_v35 = vadd.f32 %v4707_v54, %v4665_v62 }
 0x2ad   :  { %v4709_v14 = vpop.f32.mrf.mxu1 }
 0x2ae   :  { %v4710_v28 = vadd.f32 %v4709_v14, %v4667_v13 }
 0x2af   :  { %v4711_v23 = vpop.f32.mrf.mxu1 }
 0x2b0   :  { %v4712_v41 = vadd.f32 %v4711_v23, %v4669_v15 }
 0x2b1   :  { %v4713_v37 = vpop.f32.mrf.mxu1 }
 0x2b2   :  { %v4714_v38 = vadd.f32 %v4713_v37, %v4671_v8 }
 0x2ea   :  { %v4750_v24 = vpop.f32.mrf.mxu0 }
 0x2eb   :  { %v4751_v40 = vadd.f32 %v4750_v24, %v4708_v35 }
 0x2ec   :  { %v4752_v21 = vpop.f32.mrf.mxu0 }
 0x2ed   :  { %v4753_v46 = vadd.f32 %v4752_v21, %v4710_v28 }
 0x2ee   :  { %v4754_v26 = vpop.f32.mrf.mxu0 }
 0x2ef   :  { %v4755_v25 = vadd.f32 %v4754_v26, %v4712_v41 }
 0x2f0   :  { %v4756_v17 = vpop.f32.mrf.mxu0 }
 0x2f1   :  { %v4757_v0 = vadd.f32 %v4756_v17, %v4714_v38 }
 0x30a   :  { %v5665_v52 = vpop.f32.mrf.mxu0 }
 0x30b   :  { %v4793_v29 = vpop.f32.mrf.mxu1 }
 0x30c   :  { %v4794_v12 = vadd.f32 %v4793_v29, %v4751_v40  ;;  %v5666_v22 = vpop.f32.mrf.mxu0 }
 0x30d   :  { %v4795_v50 = vpop.f32.mrf.mxu1  ;;  %v5667_v5 = vadd.f32 %v5666_v22, %v5665_v52 }
 0x30e   :  { %5048 = vst [vmem:[#allocation11] sm:$0xff] %v4794_v12  ;;  %v4796_v55 = vadd.f32 %v4795_v50, %v4753_v46  ;;  %v5668_v63 = vpop.f32.mrf.mxu0 }
 0x30f   :  { %v4797_v33 = vpop.f32.mrf.mxu1  ;;  %v4837_v48 = vadd.f32 %v5667_v5, %v3004_v4 }
 0x310   :  { %5049 = vst [vmem:[#allocation11 + $0x8] sm:$0xff] %v4796_v55  ;;  %v4798_v56 = vadd.f32 %v4797_v33, %v4755_v25  ;;  %v5669_v45 = vpop.f32.mrf.mxu0 }
 0x311   :  { %v4799_v57 = vpop.f32.mrf.mxu1  ;;  %v5670_v61 = vadd.f32 %v5669_v45, %v5668_v63 }
 0x312   :  { %5051 = vst [vmem:[#allocation11 + $0x18] sm:$0xff] %v4798_v56  ;;  %v4800_v60 = vadd.f32 %v4799_v57, %v4757_v0 }
 0x313   :  { %v4840_v54 = vadd.f32 %v5670_v61, %v3004_v4 }
 0x314   :  { %5052 = vst [vmem:[#allocation11 + $0x20] sm:$0xff] %v4800_v60 }
 0x32a   :  { %v5709_v16 = vpop.f32.mrf.mxu0 }
 0x32b   :  { %v5687_v49 = vpop.f32.mrf.mxu1 }
 0x32c   :  { %v5710_v11 = vpop.f32.mrf.mxu0 }
 0x32d   :  { %v5688_v59 = vpop.f32.mrf.mxu1  ;;  %v5711_v18 = vadd.f32 %v5710_v11, %v5709_v16 }
 0x32e   :  { %v5712_v3 = vpop.f32.mrf.mxu0  ;;  %v5689_v32 = vadd.f32 %v5688_v59, %v5687_v49 }
 0x32f   :  { %v5690_v51 = vpop.f32.mrf.mxu1 }
 0x330   :  { %v5713_v7 = vpop.f32.mrf.mxu0  ;;  %v4878_v2 = vadd.f32 %v5689_v32, %v4837_v48 }
 0x331   :  { %v5691_v47 = vpop.f32.mrf.mxu1  ;;  %v5714_v30 = vadd.f32 %v5713_v7, %v5712_v3 }
 0x332   :  { %v5692_v53 = vadd.f32 %v5691_v47, %v5690_v51  ;;  %v4919_v14 = vadd.f32 %v5711_v18, %v4878_v2 }
 0x334   :  { %v4881_v24 = vadd.f32 %v5692_v53, %v4840_v54 }
 0x336   :  { %v4922_v23 = vadd.f32 %v5714_v30, %v4881_v24 }
 0x34a   :  { %v5753_v10 = vpop.f32.mrf.mxu0 }
 0x34b   :  { %v5731_v36 = vpop.f32.mrf.mxu1 }
 0x34c   :  { %v5754_v44 = vpop.f32.mrf.mxu0 }
 0x34d   :  { %v5732_v9 = vpop.f32.mrf.mxu1  ;;  %v5755_v21 = vadd.f32 %v5754_v44, %v5753_v10 }
 0x34e   :  { %v5733_v19 = vadd.f32 %v5732_v9, %v5731_v36  ;;  %v5756_v27 = vpop.f32.mrf.mxu0 }
 0x34f   :  { %v5734_v58 = vpop.f32.mrf.mxu1 }
 0x350   :  { %v4960_v42 = vadd.f32 %v5733_v19, %v4919_v14  ;;  %v5757_v43 = vpop.f32.mrf.mxu0 }
 0x351   :  { %v5735_v20 = vpop.f32.mrf.mxu1  ;;  %v5758_v37 = vadd.f32 %v5757_v43, %v5756_v27 }
 0x352   :  { %v5736_v6 = vadd.f32 %v5735_v20, %v5734_v58  ;;  %v5001_v62 = vadd.f32 %v5755_v21, %v4960_v42 }
 0x354   :  { %v4963_v34 = vadd.f32 %v5736_v6, %v4922_v23 }
 0x356   :  { %v5004_v15 = vadd.f32 %v5758_v37, %v4963_v34 }
 0x36b   :  { %v5775_v31 = vpop.f32.mrf.mxu1 }
 0x36d   :  { %v5776_v1 = vpop.f32.mrf.mxu1 }
 0x36e   :  { %v5777_v13 = vadd.f32 %v5776_v1, %v5775_v31 }
 0x36f   :  { %v5778_v35 = vpop.f32.mrf.mxu1 }
 0x370   :  { %v5042_v26 = vadd.f32 %v5777_v13, %v5001_v62 }
 0x371   :  { %v5779_v39 = vpop.f32.mrf.mxu1 }
 0x372   :  { %5050 = vst [vmem:[#allocation11 + $0x10] sm:$0xff] %v5042_v26  ;;  %v5780_v28 = vadd.f32 %v5779_v39, %v5778_v35 }
 0x374   :  { %v5045_v40 = vadd.f32 %v5780_v28, %v5004_v15 }
 0x376   :  { %5053 = vst [vmem:[#allocation11 + $0x28] sm:$0xff] %v5045_v40 }
 0x377   :  { %6770 = shalt.err (!%p6767_p1)
}
 0x378   :  { %5065 = dma.vmem_to_hbm [thread:$0]  %s5060_s4, 768, %s7134_s5, [#allocation4], %s6794_s9, %s6794_s9, %s6795_s10  }
 0x379   :  { %6785 = dma.done.wait [#allocation4], 768  }
 0x37a   :  { %6786 = vsyncadd [#allocation4], 4294966528 }
 0x37b   :  { %5069 = vsyncpa [#allocation3], 1 }
 0x37c   :  { %5070 = vsyncpa [#allocation6], 1 }
 0x37d   :  { %5071 = vsyncpa [#allocation9], 1 }
 0x37e   :  { %5072 = vsyncpa [#allocation4], 1 }

</bundles_post_ra>
